<compile_context>
chip_gen: v7x
topology: tpu7x:2x2x1
jax: 0.10.0
libtpu: 0.0.40
codegen_flags: <defaults>
</compile_context>

<pallas_src>
import functools

import numpy as np
import jax
import jax.numpy as jnp
from jax.experimental import pallas as pl
from jax.experimental.pallas import tpu as pltpu


def _silu_kernel(x):
    # x * sigmoid(x).  Approximate EUP reciprocal (error ~2^-12) co-issues with the
    # VPU instead of an exact VALU divide; well inside the accuracy budget.
    return x * pl.reciprocal(1.0 + jnp.exp(-x), approx=True)


def _silu_ref(x):
    return x * (1.0 / (1.0 + jnp.exp(-x)))


# ---------------------------------------------------------------------------
# Fused depthwise(KxK, BN, SiLU) + pointwise(1x1, BN, SiLU) kernel.
# ---------------------------------------------------------------------------
def _dwconv_lmlp_kernel(x_ref, wdw_ref, bdw_ref, wpw_ref, bpw_ref, o_ref,
                        *, K, TH, WO, C, COUT):
    # x_ref: (1, TH+K-1, WP, C) zero-padded halo window for this row tile.
    xwin = x_ref[0].astype(jnp.float32)                    # (TH+K-1, WP, C)
    wdw = wdw_ref[...].astype(jnp.float32)                 # (K*K, 1, 1, C)

    # Hoist the K width (sublane) shifts out of the dy loop: K relayout slices
    # instead of K*K; the per-tap dy slice below is a cheap row-address slice.
    cols = [xwin[:, dx:dx + WO, :] for dx in range(K)]

    # ---- depthwise KxK conv (+ folded BN) + SiLU: VPU multiply-adds ----
    # Accumulator initialized from the first tap (no zero-fill + add).
    acc = cols[0][0:TH] * wdw[0]
    for dy in range(K):
        for dx in range(K):
            if dy == 0 and dx == 0:
                continue
            acc = acc + cols[dx][dy:dy + TH] * wdw[dy * K + dx]
    acc = acc + bdw_ref[...].astype(jnp.float32)           # (1, 1, C)
    h = _silu_kernel(acc)                                  # (TH, WO, C) f32

    # ---- pointwise 1x1 conv (+ folded BN) + SiLU: one MXU matmul ----
    # Operands in wpw_ref.dtype (bf16 by default), f32 accumulation.
    w_pw = wpw_ref[...]                                    # (C, COUT)
    hm = h.reshape(TH * WO, C).astype(w_pw.dtype)
    y = jnp.dot(hm, w_pw, preferred_element_type=jnp.float32)
    y = _silu_kernel(y + bpw_ref[...].astype(jnp.float32))  # (TH*WO, COUT)

    # TODO(synk): for COUT < 128 a lane-dense (TH, WO*COUT) store would avoid
    # masked partial stores; it needs an in-kernel cross-lane relayout, left out
    # to keep Mosaic lowering simple/safe.
    o_ref[0] = y.reshape(TH, WO, COUT).astype(o_ref.dtype)


def _pick_row_tile(n, ho, wo, wp, c, cout, k, budget_bytes=8 << 20):
    """Largest row tile TH dividing HO whose per-step f32 working set fits the
    budget, preferring >= 4 total grid steps (pipelining + v7x megacore) and a
    reasonably large MXU M dimension (TH*WO)."""
    def per_step_bytes(th):
        thk = th + k - 1
        return 4 * (2 * thk * wp * c       # double-buffered halo input window
                    + 3 * th * wo * c      # f32 depthwise intermediate / lhs
                    + 4 * th * wo * cout)  # matmul result + dbl-buffered output
    divisors = [d for d in range(1, ho + 1) if ho % d == 0]
    fits = [d for d in divisors if per_step_bytes(d) <= budget_bytes] or [1]
    pref = [d for d in fits if n * (ho // d) >= 4 and d * wo >= 256]
    if pref:
        return max(pref)
    pref = [d for d in fits if n * (ho // d) >= 4]
    if pref:
        return max(pref)
    return max(fits)


def _dwconv_lmlp_pallas(xw, wdw, bdw, wpw, bpw, *, K, TH, WO, COUT):
    NR, THK, WP, C = xw.shape
    grid = (NR,)

    kern = functools.partial(_dwconv_lmlp_kernel, K=K, TH=TH, WO=WO, C=C,
                             COUT=COUT)

    # VMEM limit from the real per-step working set (double-buffered halo window
    # + f32 intermediates + double-buffered output tile + weights) with ~2x
    # headroom, capped well below v7x's 64 MiB physical VMEM per TensorCore.
    per_step = 4 * (2 * THK * WP * C + 3 * TH * WO * C + 4 * TH * WO * COUT)
    weight_bytes = 4 * (K * K * C + C * COUT + C + COUT)
    vmem_limit = int(min(48 << 20, max(8 << 20, 2 * per_step + weight_bytes)))

    return pl.pallas_call(
        kern,
        out_shape=jax.ShapeDtypeStruct((NR, TH, WO, COUT), xw.dtype),
        grid=grid,
        in_specs=[
            # One (TH+K-1, WP, C) halo window per grid step (auto-pipelined).
            pl.BlockSpec((1, THK, WP, C), lambda i: (i, 0, 0, 0)),
            pl.BlockSpec((K * K, 1, 1, C), lambda i: (0, 0, 0, 0)),
            pl.BlockSpec((1, 1, C), lambda i: (0, 0, 0)),
            pl.BlockSpec((C, COUT), lambda i: (0, 0)),
            pl.BlockSpec((1, COUT), lambda i: (0, 0)),
        ],
        out_specs=pl.BlockSpec((1, TH, WO, COUT), lambda i: (i, 0, 0, 0)),
        compiler_params=pltpu.CompilerParams(
            dimension_semantics=("parallel",),
            vmem_limit_bytes=vmem_limit),
    )(xw, wdw, bdw, wpw, bpw)


@functools.partial(jax.jit, static_argnames=("k", "stride", "use_bf16_matmul"))
def dwconv_lmlp_forward(x_nchw, wdw, bdw, wpw, bpw, *, k, stride=1,
                        use_bf16_matmul=True):
    """DWConv_LMLP forward.  Input/output in PyTorch NCHW layout."""
    if stride != 1:
        # TODO(synk): stride > 1 needs strided tap slicing in the kernel.
        raise NotImplementedError("stride != 1 not implemented")
    N, C, H, W = x_nchw.shape
    p = k // 2                                   # ultralytics autopad (odd k)
    HO, WO = H, W
    COUT = wpw.shape[1]

    # NCHW -> NHWC and zero halo pad at the module boundary.
    # TODO(synk): accept NHWC and fold the zero pad into the halo windows to
    # remove these wrapper-side HBM round trips.
    x = jnp.transpose(x_nchw, (0, 2, 3, 1))
    xp = jnp.pad(x, ((0, 0), (p, p), (p, p), (0, 0)))
    WP = W + 2 * p

    TH = _pick_row_tile(N, HO, WO, WP, C, COUT, k)
    R = HO // TH
    THK = TH + k - 1

    # Materialize overlapping row-halo windows (static indices) so a plain
    # blocked BlockSpec DMAs exactly one window per grid step.
    starts = (np.arange(R, dtype=np.int32) * TH)[:, None]
    idx = starts + np.arange(THK, dtype=np.int32)          # (R, TH+K-1)
    xw = xp[:, idx].reshape(N * R, THK, WP, C)

    if use_bf16_matmul:
        # bf16 MXU operands (f32 accumulation in-kernel); cast once here rather
        # than per grid step.
        wpw = wpw.astype(jnp.bfloat16)

    y = _dwconv_lmlp_pallas(xw, wdw, bdw, wpw, bpw, K=k, TH=TH, WO=WO,
                            COUT=COUT)
    y = y.reshape(N, HO, WO, COUT)
    return jnp.transpose(y, (0, 3, 1, 2))                   # NHWC -> NCHW


# ---------------------------------------------------------------------------
# Parameter construction: Conv2d + BatchNorm2d folded (deterministic init).
# ---------------------------------------------------------------------------
def _bn_fold_factors(key, c, eps=1e-5):
    kg, kb, km, kv = jax.random.split(key, 4)
    gamma = 1.0 + 0.1 * jax.random.normal(kg, (c,), jnp.float32)
    beta = 0.1 * jax.random.normal(kb, (c,), jnp.float32)
    mean = 0.1 * jax.random.normal(km, (c,), jnp.float32)
    var = jax.random.uniform(kv, (c,), jnp.float32, 0.5, 1.5)
    scale = gamma / jnp.sqrt(var + eps)
    return scale, beta - mean * scale


def init_dwconv_lmlp_params(key, cin, cout, k):
    kd, kdb, kpw, kpb = jax.random.split(key, 4)
    # Depthwise Conv2d(cin, cin, k, groups=cin): weight (cin, 1, k, k), no bias.
    w_d = 0.1 * jax.random.normal(kd, (cin, 1, k, k), jnp.float32)
    s_d, b_d = _bn_fold_factors(kdb, cin)
    w_df = w_d[:, 0] * s_d[:, None, None]                        # (cin, k, k)
    wdw = jnp.transpose(w_df, (1, 2, 0)).reshape(k * k, 1, 1, cin)
    bdw = b_d.reshape(1, 1, cin)
    # Pointwise Conv2d(cin, cout, 1): weight (cout, cin, 1, 1), no bias.
    w_p = 0.1 * jax.random.normal(kpw, (cout, cin, 1, 1), jnp.float32)
    s_p, b_p = _bn_fold_factors(kpb, cout)
    wpw = jnp.transpose(w_p[:, :, 0, 0] * s_p[:, None], (1, 0))  # (cin, cout)
    bpw = b_p.reshape(1, cout)
    return dict(k=k, cin=cin, cout=cout, wdw=wdw, bdw=bdw, wpw=wpw, bpw=bpw)


# ---------------------------------------------------------------------------
# Pure-JAX reference (same folded params) for correctness checks.
# ---------------------------------------------------------------------------
def _reference(x_nchw, params):
    k, cin, cout = params["k"], params["cin"], params["cout"]
    x = jnp.transpose(x_nchw, (0, 2, 3, 1))
    wd = params["wdw"].reshape(k, k, 1, cin)
    h = jax.lax.conv_general_dilated(
        x, wd, window_strides=(1, 1), padding="SAME",
        dimension_numbers=("NHWC", "HWIO", "NHWC"),
        feature_group_count=cin, precision=jax.lax.Precision.HIGHEST)
    h = h + params["bdw"].reshape(1, 1, 1, cin)
    h = _silu_ref(h)
    y = jnp.einsum("nhwc,cd->nhwd", h, params["wpw"],
                   precision=jax.lax.Precision.HIGHEST)
    y = _silu_ref(y + params["bpw"].reshape(1, 1, 1, cout))
    return jnp.transpose(y, (0, 3, 1, 2))


if __name__ == "__main__":
    key = jax.random.PRNGKey(0)
    kx, kp = jax.random.split(key)

    N, CIN, COUT, H, W, K = 2, 4, 8, 16, 16, 3
    x = jax.random.normal(kx, (N, CIN, H, W), jnp.float32)
    params = init_dwconv_lmlp_params(kp, CIN, COUT, K)

    ref = _reference(x, params)

    # Default path: bf16 MXU operands, f32 accumulation.
    out = dwconv_lmlp_forward(x, params["wdw"], params["bdw"],
                              params["wpw"], params["bpw"], k=K)
    out = jax.block_until_ready(out)
    assert out.shape == (N, COUT, H, W), out.shape
    assert bool(jnp.all(jnp.isfinite(out)))
    assert bool(jnp.allclose(out, ref, rtol=1e-2, atol=1e-2)), \
        float(jnp.max(jnp.abs(out - ref)))

    # Exact-precision path (f32 MXU operands) against the f32 reference.
    out32 = dwconv_lmlp_forward(x, params["wdw"], params["bdw"],
                                params["wpw"], params["bpw"], k=K,
                                use_bf16_matmul=False)
    out32 = jax.block_until_ready(out32)
    assert bool(jnp.allclose(out32, ref, rtol=2e-3, atol=2e-3)), \
        float(jnp.max(jnp.abs(out32 - ref)))

    print("KERNEL_OK")
</pallas_src>

<mosaic_0001>
module attributes {stable_mosaic.version = 11 : i64} {
  func.func @_dwconv_lmlp_kernel(%arg0: i32, %arg1: memref<1x10x18x4xf32, #tpu.memory_space<vmem>>, %arg2: memref<9x1x1x4xf32, #tpu.memory_space<vmem>>, %arg3: memref<1x1x4xf32, #tpu.memory_space<vmem>>, %arg4: memref<4x8xbf16, #tpu.memory_space<vmem>>, %arg5: memref<1x8xf32, #tpu.memory_space<vmem>>, %arg6: memref<1x8x16x8xf32, #tpu.memory_space<vmem>>) attributes {dimension_semantics = [#tpu.dimension_semantics<parallel>], iteration_bounds = array<i64: 4>, scalar_prefetch = 0 : i64, scratch_operands = 0 : i64, tpu.core_type = #tpu.core_type<tc>, window_params = [{transform_indices = @transform_0, window_bounds = array<i64: 1, 10, 18, 4>}, {pipeline_mode = #tpu.pipeline_mode<synchronous>, transform_indices = @transform_1, window_bounds = array<i64: 9, 1, 1, 4>}, {pipeline_mode = #tpu.pipeline_mode<synchronous>, transform_indices = @transform_2, window_bounds = array<i64: 1, 1, 4>}, {pipeline_mode = #tpu.pipeline_mode<synchronous>, transform_indices = @transform_3, window_bounds = array<i64: 4, 8>}, {pipeline_mode = #tpu.pipeline_mode<synchronous>, transform_indices = @transform_4, window_bounds = array<i64: 1, 8>}, {transform_indices = @transform_5, window_bounds = array<i64: 1, 8, 16, 8>}]} {
    %c0 = arith.constant 0 : index
    %c0_0 = arith.constant 0 : index
    %c0_1 = arith.constant 0 : index
    %c0_2 = arith.constant 0 : index
    %0 = vector.load %arg1[%c0, %c0_0, %c0_1, %c0_2] : memref<1x10x18x4xf32, #tpu.memory_space<vmem>>, vector<1x10x18x4xf32>
    %1 = vector.shape_cast %0 : vector<1x10x18x4xf32> to vector<10x18x4xf32>
    %c0_3 = arith.constant 0 : index
    %c0_4 = arith.constant 0 : index
    %c0_5 = arith.constant 0 : index
    %c0_6 = arith.constant 0 : index
    %2 = vector.load %arg2[%c0_3, %c0_4, %c0_5, %c0_6] : memref<9x1x1x4xf32, #tpu.memory_space<vmem>>, vector<9x1x1x4xf32>
    %3 = vector.extract_strided_slice %1 {offsets = [0, 0, 0], sizes = [10, 16, 4], strides = [1, 1, 1]} : vector<10x18x4xf32> to vector<10x16x4xf32>
    %4 = vector.extract_strided_slice %1 {offsets = [0, 1, 0], sizes = [10, 16, 4], strides = [1, 1, 1]} : vector<10x18x4xf32> to vector<10x16x4xf32>
    %5 = vector.extract_strided_slice %1 {offsets = [0, 2, 0], sizes = [10, 16, 4], strides = [1, 1, 1]} : vector<10x18x4xf32> to vector<10x16x4xf32>
    %6 = vector.extract_strided_slice %3 {offsets = [0, 0, 0], sizes = [8, 16, 4], strides = [1, 1, 1]} : vector<10x16x4xf32> to vector<8x16x4xf32>
    %7 = vector.extract_strided_slice %2 {offsets = [0, 0, 0, 0], sizes = [1, 1, 1, 4], strides = [1, 1, 1, 1]} : vector<9x1x1x4xf32> to vector<1x1x1x4xf32>
    %8 = vector.shape_cast %7 : vector<1x1x1x4xf32> to vector<1x1x4xf32>
    %9 = vector.broadcast %8 : vector<1x1x4xf32> to vector<8x16x4xf32>
    %10 = arith.mulf %6, %9 : vector<8x16x4xf32>
    %11 = vector.extract_strided_slice %4 {offsets = [0, 0, 0], sizes = [8, 16, 4], strides = [1, 1, 1]} : vector<10x16x4xf32> to vector<8x16x4xf32>
    %12 = vector.extract_strided_slice %2 {offsets = [1, 0, 0, 0], sizes = [1, 1, 1, 4], strides = [1, 1, 1, 1]} : vector<9x1x1x4xf32> to vector<1x1x1x4xf32>
    %13 = vector.shape_cast %12 : vector<1x1x1x4xf32> to vector<1x1x4xf32>
    %14 = vector.broadcast %13 : vector<1x1x4xf32> to vector<8x16x4xf32>
    %15 = arith.mulf %11, %14 : vector<8x16x4xf32>
    %16 = arith.addf %10, %15 : vector<8x16x4xf32>
    %17 = vector.extract_strided_slice %5 {offsets = [0, 0, 0], sizes = [8, 16, 4], strides = [1, 1, 1]} : vector<10x16x4xf32> to vector<8x16x4xf32>
    %18 = vector.extract_strided_slice %2 {offsets = [2, 0, 0, 0], sizes = [1, 1, 1, 4], strides = [1, 1, 1, 1]} : vector<9x1x1x4xf32> to vector<1x1x1x4xf32>
    %19 = vector.shape_cast %18 : vector<1x1x1x4xf32> to vector<1x1x4xf32>
    %20 = vector.broadcast %19 : vector<1x1x4xf32> to vector<8x16x4xf32>
    %21 = arith.mulf %17, %20 : vector<8x16x4xf32>
    %22 = arith.addf %16, %21 : vector<8x16x4xf32>
    %23 = vector.extract_strided_slice %3 {offsets = [1, 0, 0], sizes = [8, 16, 4], strides = [1, 1, 1]} : vector<10x16x4xf32> to vector<8x16x4xf32>
    %24 = vector.extract_strided_slice %2 {offsets = [3, 0, 0, 0], sizes = [1, 1, 1, 4], strides = [1, 1, 1, 1]} : vector<9x1x1x4xf32> to vector<1x1x1x4xf32>
    %25 = vector.shape_cast %24 : vector<1x1x1x4xf32> to vector<1x1x4xf32>
    %26 = vector.broadcast %25 : vector<1x1x4xf32> to vector<8x16x4xf32>
    %27 = arith.mulf %23, %26 : vector<8x16x4xf32>
    %28 = arith.addf %22, %27 : vector<8x16x4xf32>
    %29 = vector.extract_strided_slice %4 {offsets = [1, 0, 0], sizes = [8, 16, 4], strides = [1, 1, 1]} : vector<10x16x4xf32> to vector<8x16x4xf32>
    %30 = vector.extract_strided_slice %2 {offsets = [4, 0, 0, 0], sizes = [1, 1, 1, 4], strides = [1, 1, 1, 1]} : vector<9x1x1x4xf32> to vector<1x1x1x4xf32>
    %31 = vector.shape_cast %30 : vector<1x1x1x4xf32> to vector<1x1x4xf32>
    %32 = vector.broadcast %31 : vector<1x1x4xf32> to vector<8x16x4xf32>
    %33 = arith.mulf %29, %32 : vector<8x16x4xf32>
    %34 = arith.addf %28, %33 : vector<8x16x4xf32>
    %35 = vector.extract_strided_slice %5 {offsets = [1, 0, 0], sizes = [8, 16, 4], strides = [1, 1, 1]} : vector<10x16x4xf32> to vector<8x16x4xf32>
    %36 = vector.extract_strided_slice %2 {offsets = [5, 0, 0, 0], sizes = [1, 1, 1, 4], strides = [1, 1, 1, 1]} : vector<9x1x1x4xf32> to vector<1x1x1x4xf32>
    %37 = vector.shape_cast %36 : vector<1x1x1x4xf32> to vector<1x1x4xf32>
    %38 = vector.broadcast %37 : vector<1x1x4xf32> to vector<8x16x4xf32>
    %39 = arith.mulf %35, %38 : vector<8x16x4xf32>
    %40 = arith.addf %34, %39 : vector<8x16x4xf32>
    %41 = vector.extract_strided_slice %3 {offsets = [2, 0, 0], sizes = [8, 16, 4], strides = [1, 1, 1]} : vector<10x16x4xf32> to vector<8x16x4xf32>
    %42 = vector.extract_strided_slice %2 {offsets = [6, 0, 0, 0], sizes = [1, 1, 1, 4], strides = [1, 1, 1, 1]} : vector<9x1x1x4xf32> to vector<1x1x1x4xf32>
    %43 = vector.shape_cast %42 : vector<1x1x1x4xf32> to vector<1x1x4xf32>
    %44 = vector.broadcast %43 : vector<1x1x4xf32> to vector<8x16x4xf32>
    %45 = arith.mulf %41, %44 : vector<8x16x4xf32>
    %46 = arith.addf %40, %45 : vector<8x16x4xf32>
    %47 = vector.extract_strided_slice %4 {offsets = [2, 0, 0], sizes = [8, 16, 4], strides = [1, 1, 1]} : vector<10x16x4xf32> to vector<8x16x4xf32>
    %48 = vector.extract_strided_slice %2 {offsets = [7, 0, 0, 0], sizes = [1, 1, 1, 4], strides = [1, 1, 1, 1]} : vector<9x1x1x4xf32> to vector<1x1x1x4xf32>
    %49 = vector.shape_cast %48 : vector<1x1x1x4xf32> to vector<1x1x4xf32>
    %50 = vector.broadcast %49 : vector<1x1x4xf32> to vector<8x16x4xf32>
    %51 = arith.mulf %47, %50 : vector<8x16x4xf32>
    %52 = arith.addf %46, %51 : vector<8x16x4xf32>
    %53 = vector.extract_strided_slice %5 {offsets = [2, 0, 0], sizes = [8, 16, 4], strides = [1, 1, 1]} : vector<10x16x4xf32> to vector<8x16x4xf32>
    %54 = vector.extract_strided_slice %2 {offsets = [8, 0, 0, 0], sizes = [1, 1, 1, 4], strides = [1, 1, 1, 1]} : vector<9x1x1x4xf32> to vector<1x1x1x4xf32>
    %55 = vector.shape_cast %54 : vector<1x1x1x4xf32> to vector<1x1x4xf32>
    %56 = vector.broadcast %55 : vector<1x1x4xf32> to vector<8x16x4xf32>
    %57 = arith.mulf %53, %56 : vector<8x16x4xf32>
    %58 = arith.addf %52, %57 : vector<8x16x4xf32>
    %c0_7 = arith.constant 0 : index
    %c0_8 = arith.constant 0 : index
    %c0_9 = arith.constant 0 : index
    %59 = vector.load %arg3[%c0_7, %c0_8, %c0_9] : memref<1x1x4xf32, #tpu.memory_space<vmem>>, vector<1x1x4xf32>
    %60 = vector.broadcast %59 : vector<1x1x4xf32> to vector<8x16x4xf32>
    %61 = arith.addf %58, %60 : vector<8x16x4xf32>
    %cst = arith.constant 0.000000e+00 : f32
    %62 = vector.broadcast %cst : f32 to vector<8x16x4xf32>
    %63 = arith.subf %62, %61 : vector<8x16x4xf32>
    %64 = math.exp %63 : vector<8x16x4xf32>
    %cst_10 = arith.constant 1.000000e+00 : f32
    %65 = vector.broadcast %cst_10 : f32 to vector<8x16x4xf32>
    %66 = arith.addf %65, %64 : vector<8x16x4xf32>
    %67 = tpu.reciprocal %66 {approx = true} : vector<8x16x4xf32> -> vector<8x16x4xf32>
    %68 = arith.mulf %61, %67 : vector<8x16x4xf32>
    %c0_11 = arith.constant 0 : index
    %c0_12 = arith.constant 0 : index
    %69 = vector.load %arg4[%c0_11, %c0_12] : memref<4x8xbf16, #tpu.memory_space<vmem>>, vector<4x8xbf16>
    %70 = vector.shape_cast %68 : vector<8x16x4xf32> to vector<128x4xf32>
    %71 = arith.truncf %70 : vector<128x4xf32> to vector<128x4xbf16>
    %cst_13 = arith.constant dense<0.000000e+00> : vector<128x8xf32>
    %72 = tpu.matmul %71, %69, %cst_13 {dimension_numbers = #tpu.dot_dimension_numbers<[1], [0], [0], [1], [0, 0, 1, 1], [], []>} : vector<128x4xbf16>, vector<4x8xbf16>, vector<128x8xf32> -> vector<128x8xf32>
    %c0_14 = arith.constant 0 : index
    %c0_15 = arith.constant 0 : index
    %73 = vector.load %arg5[%c0_14, %c0_15] : memref<1x8xf32, #tpu.memory_space<vmem>>, vector<1x8xf32>
    %74 = vector.broadcast %73 : vector<1x8xf32> to vector<128x8xf32>
    %75 = arith.addf %72, %74 : vector<128x8xf32>
    %cst_16 = arith.constant 0.000000e+00 : f32
    %76 = vector.broadcast %cst_16 : f32 to vector<128x8xf32>
    %77 = arith.subf %76, %75 : vector<128x8xf32>
    %78 = math.exp %77 : vector<128x8xf32>
    %cst_17 = arith.constant 1.000000e+00 : f32
    %79 = vector.broadcast %cst_17 : f32 to vector<128x8xf32>
    %80 = arith.addf %79, %78 : vector<128x8xf32>
    %81 = tpu.reciprocal %80 {approx = true} : vector<128x8xf32> -> vector<128x8xf32>
    %82 = arith.mulf %75, %81 : vector<128x8xf32>
    %83 = vector.shape_cast %82 : vector<128x8xf32> to vector<8x16x8xf32>
    %c0_18 = arith.constant 0 : index
    %c0_19 = arith.constant 0 : index
    %c0_20 = arith.constant 0 : index
    %c0_21 = arith.constant 0 : index
    %84 = vector.load %arg6[%c0_18, %c0_19, %c0_20, %c0_21] : memref<1x8x16x8xf32, #tpu.memory_space<vmem>>, vector<1x8x16x8xf32>
    %85 = vector.shape_cast %84 : vector<1x8x16x8xf32> to vector<8x16x8xf32>
    %86 = vector.shape_cast %83 : vector<8x16x8xf32> to vector<1x8x16x8xf32>
    tpu.vector_store %arg6[%c0_18, %c0_19, %c0_20, %c0_21], %86 {strides = array<i32>} : memref<1x8x16x8xf32, #tpu.memory_space<vmem>>, vector<1x8x16x8xf32>,
    return
  }
  func.func @transform_0(%arg0: i32) -> (i32, i32, i32, i32) {
    %c0_i32 = arith.constant 0 : i32
    %c0_i32_0 = arith.constant 0 : i32
    %c0_i32_1 = arith.constant 0 : i32
    %c0_i32_2 = arith.constant 0 : i32
    return %arg0, %c0_i32, %c0_i32_0, %c0_i32_1 : i32, i32, i32, i32
  }
  func.func @transform_1(%arg0: i32) -> (i32, i32, i32, i32) {
    %c0_i32 = arith.constant 0 : i32
    %c0_i32_0 = arith.constant 0 : i32
    %c0_i32_1 = arith.constant 0 : i32
    %c0_i32_2 = arith.constant 0 : i32
    %c0_i32_3 = arith.constant 0 : i32
    return %c0_i32, %c0_i32_0, %c0_i32_1, %c0_i32_2 : i32, i32, i32, i32
  }
  func.func @transform_2(%arg0: i32) -> (i32, i32, i32) {
    %c0_i32 = arith.constant 0 : i32
    %c0_i32_0 = arith.constant 0 : i32
    %c0_i32_1 = arith.constant 0 : i32
    %c0_i32_2 = arith.constant 0 : i32
    return %c0_i32, %c0_i32_0, %c0_i32_1 : i32, i32, i32
  }
  func.func @transform_3(%arg0: i32) -> (i32, i32) {
    %c0_i32 = arith.constant 0 : i32
    %c0_i32_0 = arith.constant 0 : i32
    %c0_i32_1 = arith.constant 0 : i32
    return %c0_i32, %c0_i32_0 : i32, i32
  }
  func.func @transform_4(%arg0: i32) -> (i32, i32) {
    %c0_i32 = arith.constant 0 : i32
    %c0_i32_0 = arith.constant 0 : i32
    %c0_i32_1 = arith.constant 0 : i32
    return %c0_i32, %c0_i32_0 : i32, i32
  }
  func.func @transform_5(%arg0: i32) -> (i32, i32, i32, i32) {
    %c0_i32 = arith.constant 0 : i32
    %c0_i32_0 = arith.constant 0 : i32
    %c0_i32_1 = arith.constant 0 : i32
    %c0_i32_2 = arith.constant 0 : i32
    return %arg0, %c0_i32, %c0_i32_0, %c0_i32_1 : i32, i32, i32, i32
  }
}

</mosaic_0001>

<bundles_post_ra>
// kernel: dwconv_lmlp_forward.1
= control target key start
LH: loop header
LB: loop body
LE: loop exit
PB: predicated region body
PF: predicated region fallthrough
CT: control target
= control target key end

     0   :  { %s1796_s18 = smov 0   ;;  %s2613_s0 = inlined_call_operand.vmem [shape: f32[4,10,18,4], index: 0, kind: input, shape index: {}]   ;;  %s2614_s1 = inlined_call_operand.vmem [shape: f32[9,1,1,4], index: 1, kind: input, shape index: {}]   ;;  %s2615_s2 = inlined_call_operand.vmem [shape: f32[1,1,4], index: 2, kind: input, shape index: {}]   ;;  %s2616_s3 = inlined_call_operand.vmem [shape: bf16[4,8], index: 3, kind: input, shape index: {}]   ;;  %s2617_s4 = inlined_call_operand.vmem [shape: f32[1,8], index: 4, kind: input, shape index: {}]   ;;  %s2618_s5 = inlined_call_operand.vmem [shape: f32[4,8,16,8], index: 5, kind: output, shape index: {}]  }
   0x1 LB: > { %s1550_s19 = sadd.s32 4294967295, %s1764_s18   ;;  %p1554_p0 = scmp.ge.s32.totalorder %s1764_s18, 1  ;;  %s1764_s18 = sphi %s1796_s18, %s15_s18  }
   0x2   : > { %p187_p1 = scmp.lt.s32.totalorder %s1764_s18, 5 }
   0x4   : > { %p188_p2 = pnand %p1554_p0, %p187_p1 }
   0x5   : > { %v1240_v0 = vld [vmem:[%s2616_s3] sm:$0x3] (!%p188_p2)  ;;  %vm1281_vm0 = vcmask (!%p188_p2), 1041408   ;;  %p215_p3 = scmp.lt.s32.totalorder (!%p188_p2), %s1550_s19, 3  ;;  %v1828_v4 = vld [vmem:[%s2614_s1 + $0x2] ss:$0 sm:$0xff] (!%p188_p2) }
   0x6   : > { %191 = sbr.rel (%p188_p2) target bundleno = 468 (0x1d4), region = 40  ;;  %1609 = vmatprep.subr.msk.bf16.mxu0 (!%p188_p2), %vm1281_vm0, %v1240_v0  ;;  %1610 = vmatprep.subr.msk.bf16.mxu1 (!%p188_p2), %vm1281_vm0, %v1240_v0  ;;  %v1283_v1 = vsel (!%p188_p2), %vm1281_vm0, %v1240_v0, 0  ;;  %v1813_v2 = vld [vmem:[%s2614_s1] ss:$0 sm:$0xff] (!%p188_p2)  ;;  %v1818_v3 = vld [vmem:[%s2614_s1 + $0x1] ss:$0 sm:$0xff] (!%p188_p2) }
   0x7   : > { %1590 = vmatpush3.bf16.msra.mxu0 (!%p188_p2), %v1283_v1  ;;  %1608 = vmatpush3.bf16.msra.mxu1 (!%p188_p2), %v1283_v1  ;;  %vm341_vm1 = vcmask (!%p188_p2), 1046528   ;;  %vm468_vm2 = vcmask (!%p188_p2), 1045504   ;;  %v1850_v18 = vld [vmem:[%s2614_s1 + $0x3] ss:$0 sm:$0xff] (!%p188_p2)  ;;  %v1867_v28 = vld [vmem:[%s2614_s1 + $0x4] ss:$0 sm:$0xff] (!%p188_p2) }
   0x8   : > { %v1877_v34 = vld [vmem:[%s2614_s1 + $0x5] ss:$0 sm:$0xff] (!%p188_p2)  ;;  %v1895_v47 = vld [vmem:[%s2614_s1 + $0x6] ss:$0 sm:$0xff] (!%p188_p2)  ;;  %v1900_v48 = vld [vmem:[%s2614_s1 + $0x7] ss:$0 sm:$0xff] (!%p188_p2) }
   0x9   : > { %v1910_v53 = vld [vmem:[%s2614_s1 + $0x8] ss:$0 sm:$0xff] (!%p188_p2)  ;;  %vm1256_vm3 = vcmask (!%p188_p2), 31744   ;;  %vm1478_vm4 = vcmask (!%p188_p2), 64512  }
   0xd   : > { %s2620_s19 = smov (!%p215_p3, %s1550_s19), 3 }
   0xe   : > { %s1611_s22 = smul.u32 240, %s2620_s19 }
  0x10   : > { %s1823_s29 = scalar_lea.vmem %s2613_s0, %s1611_s22  ;;  %s1579_s22 = sshll.u32 %s2620_s19, 7 }
  0x11   : > { %v226_v5 = vld [vmem:[%s1823_s29] sm:$0xff]  ;;  %v227_v6 = vld [vmem:[%s1823_s29 + $0x8] sm:$0xff]  ;;  %v228_v7 = vld [vmem:[%s1823_s29 + $0x10] sm:$0x3]  ;;  %s2568_s25 = scalar_lea.vmem %s2618_s5, %s1579_s22 }
  0x12   : > { %v231_v8 = vld [vmem:[%s1823_s29 + $0x28] sm:$0x3]  ;;  %v271_v9 = vmul.f32 %v1813_v2, %v226_v5  ;;  %v272_v10 = vmul.f32 %v1813_v2, %v227_v6  ;;  %v293_v11 = vmul.f32 %v1818_v3, %v226_v5  ;;  %v294_v12 = vmul.f32 %v1818_v3, %v227_v6  ;;  %v1839_v13 = vld [vmem:[%s1823_s29 + $0x40] sm:$0x3]  ;;  %v1862_v27 = vld [vmem:[%s1823_s29 + $0x18] sm:$0xff] }
  0x13   : > { %v295_v14 = vmul.f32 %v1818_v3, %v228_v7  ;;  %v1843_v15 = vmul.f32 %v1818_v3, %v231_v8  ;;  %v420_v16 = vmul.f32 %v1828_v4, %v226_v5  ;;  %v421_v17 = vmul.f32 %v1828_v4, %v227_v6  ;;  %v1872_v33 = vld [vmem:[%s1823_s29 + $0x20] sm:$0xff]  ;;  %v1913_v58 = vld [vmem:[%s1823_s29 + $0x30] sm:$0xff]  ;;  %v1916_v59 = vld [vmem:[%s1823_s29 + $0x38] sm:$0xff] }
  0x14   : > { %v1854_v19 = vmul.f32 %v1818_v3, %v1839_v13  ;;  %v342_v20 = vrot.slane %v293_v11, 1  ;;  %v343_v21 = vrot.slane %v294_v12, 1  ;;  %v422_v22 = vmul.f32 %v1828_v4, %v228_v7 }
  0x15   : > { %v345_v23 = vrot.slane %v295_v14, 1  ;;  %v350_v24 = vrot.slane %v1843_v15, 1  ;;  %v1859_v25 = vmul.f32 %v1828_v4, %v231_v8  ;;  %v469_v26 = vrot.slane %v420_v16, 2 }
  0x16   : > { %v344_v29 = vsel %vm341_vm1, %v342_v20, %v343_v21  ;;  %v355_v30 = vrot.slane %v1854_v19, 1  ;;  %v470_v31 = vrot.slane %v421_v17, 2  ;;  %v472_v32 = vrot.slane %v422_v22, 2 }
  0x17   : > { %v346_v35 = vsel %vm341_vm1, %v343_v21, %v345_v23  ;;  %v398_v36 = vadd.f32 %v344_v29, %v271_v9  ;;  %v477_v37 = vrot.slane %v1859_v25, 2  ;;  %v547_v38 = vmul.f32 %v1850_v18, %v1862_v27 }
  0x18   : > { %v399_v39 = vadd.f32 %v346_v35, %v272_v10  ;;  %v471_v40 = vsel %vm468_vm2, %v469_v26, %v470_v31  ;;  %v473_v41 = vsel %vm468_vm2, %v470_v31, %v472_v32  ;;  %v548_v42 = vmul.f32 %v1850_v18, %v1872_v33  ;;  %v1939_v32 = vld [vmem:[%s1823_s29 + $0x60] sm:$0xff]  ;;  %v1942_v35 = vld [vmem:[%s1823_s29 + $0x68] sm:$0xff] }
  0x19   : > { %v525_v43 = vadd.f32 %v471_v40, %v398_v36  ;;  %v585_v44 = vmul.f32 %v1867_v28, %v1862_v27  ;;  %v586_v45 = vmul.f32 %v1867_v28, %v1872_v33  ;;  %v587_v46 = vmul.f32 %v1867_v28, %v231_v8 }
  0x1a   : > { %v526_v49 = vadd.f32 %v473_v41, %v399_v39  ;;  %v711_v50 = vmul.f32 %v1877_v34, %v1862_v27  ;;  %v712_v51 = vmul.f32 %v1877_v34, %v1872_v33  ;;  %v713_v52 = vmul.f32 %v1877_v34, %v231_v8  ;;  %v1945_v41 = vld [vmem:[%s1823_s29 + $0x70] sm:$0x3] }
  0x1b   : > { %v563_v54 = vadd.f32 %v547_v38, %v525_v43  ;;  %v633_v55 = vrot.slane %v585_v44, 1  ;;  %v634_v56 = vrot.slane %v586_v45, 1  ;;  %v636_v57 = vrot.slane %v587_v46, 1 }
  0x1c   : > { %v564_v60 = vadd.f32 %v548_v42, %v526_v49  ;;  %v759_v61 = vrot.slane %v711_v50, 2  ;;  %v760_v62 = vrot.slane %v712_v51, 2  ;;  %v762_v63 = vrot.slane %v713_v52, 2  ;;  %v1948_v42 = vld [vmem:[%s1823_s29 + $0xa0] sm:$0x3] }
  0x1d   : > { %v635_v0 = vsel %vm341_vm1, %v633_v55, %v634_v56  ;;  %v637_v1 = vsel %vm341_vm1, %v634_v56, %v636_v57  ;;  %v837_v5 = vmul.f32 %v1895_v47, %v1913_v58  ;;  %v838_v6 = vmul.f32 %v1895_v47, %v1916_v59 }
  0x1e   : > { %v689_v7 = vadd.f32 %v635_v0, %v563_v54  ;;  %v690_v8 = vadd.f32 %v637_v1, %v564_v60  ;;  %v761_v9 = vsel %vm468_vm2, %v759_v61, %v760_v62  ;;  %v763_v10 = vsel %vm468_vm2, %v760_v62, %v762_v63  ;;  %v1961_v54 = vld [vmem:[%s2615_s2] ss:$0 sm:$0xff] }
  0x1f   : > { %v875_v11 = vmul.f32 %v1900_v48, %v1913_v58  ;;  %v876_v12 = vmul.f32 %v1900_v48, %v1916_v59  ;;  %v877_v14 = vmul.f32 %v1900_v48, %v1839_v13  ;;  %v1001_v16 = vmul.f32 %v1910_v53, %v1913_v58 }
  0x20   : > { %v815_v17 = vadd.f32 %v761_v9, %v689_v7  ;;  %v816_v20 = vadd.f32 %v763_v10, %v690_v8  ;;  %v1002_v21 = vmul.f32 %v1910_v53, %v1916_v59  ;;  %v1003_v22 = vmul.f32 %v1910_v53, %v1839_v13  ;;  %v1985_v10 = vld [vmem:[%s1823_s29 + $0x78] sm:$0xff] }
  0x21   : > { %v923_v23 = vrot.slane %v875_v11, 1  ;;  %v924_v26 = vrot.slane %v876_v12, 1  ;;  %v926_v29 = vrot.slane %v877_v14, 1  ;;  %v1049_v31 = vrot.slane %v1001_v16, 2 }
  0x22   : > { %v853_v36 = vadd.f32 %v837_v5, %v815_v17  ;;  %v854_v38 = vadd.f32 %v838_v6, %v816_v20  ;;  %v1050_v39 = vrot.slane %v1002_v21, 2  ;;  %v1052_v40 = vrot.slane %v1003_v22, 2 }
  0x23   : > { %v925_v43 = vsel %vm341_vm1, %v923_v23, %v924_v26  ;;  %v927_v44 = vsel %vm341_vm1, %v924_v26, %v926_v29  ;;  %v279_v45 = vmul.f32 %v1813_v2, %v1939_v32  ;;  %v280_v46 = vmul.f32 %v1813_v2, %v1942_v35  ;;  %v1996_v23 = vld [vmem:[%s1823_s29 + $0x80] sm:$0xff] }
  0x24   : > { %v979_v49 = vadd.f32 %v925_v43, %v853_v36  ;;  %v980_v50 = vadd.f32 %v927_v44, %v854_v38  ;;  %v1051_v51 = vsel %vm468_vm2, %v1049_v31, %v1050_v39  ;;  %v1053_v52 = vsel %vm468_vm2, %v1050_v39, %v1052_v40  ;;  %v2004_v44 = vld [vmem:[%s1823_s29 + $0x88] sm:$0x3] }
  0x25   : > { %v305_v55 = vmul.f32 %v1818_v3, %v1939_v32  ;;  %v306_v56 = vmul.f32 %v1818_v3, %v1942_v35  ;;  %v307_v57 = vmul.f32 %v1818_v3, %v1945_v41  ;;  %v1971_v60 = vmul.f32 %v1818_v3, %v1948_v42 }
  0x26   : > { %v1105_v61 = vadd.f32 %v1051_v51, %v979_v49  ;;  %v1106_v62 = vadd.f32 %v1053_v52, %v980_v50  ;;  %v432_v63 = vmul.f32 %v1828_v4, %v1939_v32  ;;  %v433_v0 = vmul.f32 %v1828_v4, %v1942_v35 }
  0x27   : > { %v362_v1 = vrot.slane %v305_v55, 1  ;;  %v363_v5 = vrot.slane %v306_v56, 1  ;;  %v365_v6 = vrot.slane %v307_v57, 1  ;;  %v375_v7 = vrot.slane %v1971_v60, 1 }
  0x28   : > { %v1979_v8 = vadd.f32 %v1961_v54, %v1105_v61  ;;  %v1982_v9 = vadd.f32 %v1961_v54, %v1106_v62  ;;  %v434_v11 = vmul.f32 %v1828_v4, %v1945_v41  ;;  %v489_v12 = vrot.slane %v432_v63, 2  ;;  %v2014_v61 = vld [vmem:[%s1823_s29 + $0x90] sm:$0xff] }
  0x29   : > { %v364_v14 = vsel %vm341_vm1, %v362_v1, %v363_v5  ;;  %v366_v16 = vsel %vm341_vm1, %v363_v5, %v365_v6  ;;  %v490_v17 = vrot.slane %v433_v0, 2  ;;  %v555_v20 = vmul.f32 %v1850_v18, %v1985_v10 }
  0x2a   : > { %v1144_v21 = vsub.f32 0.0, %v1979_v8  ;;  %v1145_v22 = vsub.f32 0.0, %v1982_v9  ;;  %v406_v26 = vadd.f32 %v364_v14, %v279_v45  ;;  %v407_v29 = vadd.f32 %v366_v16, %v280_v46 }
  0x2b   : > { %v491_v31 = vsel %vm468_vm2, %v489_v12, %v490_v17  ;;  %v492_v36 = vrot.slane %v434_v11, 2  ;;  %v556_v38 = vmul.f32 %v1850_v18, %v1996_v23  ;;  %v597_v39 = vmul.f32 %v1867_v28, %v1985_v10  ;;  %v2024_v12 = vld [vmem:[%s1823_s29 + $0x98] sm:$0xff] }
  0x2c   : > { %v1160_v40 = vmul.f32 1.442695, %v1144_v21  ;;  %v1162_v43 = vmul.f32 1.442695, %v1145_v22  ;;  %v533_v49 = vadd.f32 %v491_v31, %v406_v26  ;;  %v598_v50 = vmul.f32 %v1867_v28, %v1996_v23 }
  0x2d   : > { %v493_v45 = vsel %vm468_vm2, %v490_v17, %v492_v36  ;;  %v599_v46 = vmul.f32 %v1867_v28, %v2004_v44  ;;  %v653_v51 = vrot.slane %v597_v39, 1  ;;  %v723_v52 = vmul.f32 %v1877_v34, %v1985_v10 }
  0x2e   : > { %1620 = vpow2.f32 %v1160_v40  ;;  %v534_v55 = vadd.f32 %v493_v45, %v407_v29  ;;  %v571_v56 = vadd.f32 %v555_v20, %v533_v49  ;;  %v654_v57 = vrot.slane %v598_v50, 1 }
  0x2f   : > { %1622 = vpow2.f32 %v1162_v43  ;;  %v656_v62 = vrot.slane %v599_v46, 1  ;;  %v724_v63 = vmul.f32 %v1877_v34, %v1996_v23  ;;  %v725_v0 = vmul.f32 %v1877_v34, %v2004_v44 }
  0x30   : > { %v572_v1 = vadd.f32 %v556_v38, %v534_v55  ;;  %v655_v5 = vsel %vm341_vm1, %v653_v51, %v654_v57  ;;  %v779_v6 = vrot.slane %v723_v52, 2  ;;  %v845_v11 = vmul.f32 %v1895_v47, %v2014_v61 }
  0x31   : > { %v657_v14 = vsel %vm341_vm1, %v654_v57, %v656_v62  ;;  %v697_v16 = vadd.f32 %v655_v5, %v571_v56  ;;  %v780_v17 = vrot.slane %v724_v63, 2  ;;  %v782_v20 = vrot.slane %v725_v0, 2 }
  0x32   : > { %v698_v21 = vadd.f32 %v657_v14, %v572_v1  ;;  %v846_v22 = vmul.f32 %v1895_v47, %v2024_v12  ;;  %v887_v26 = vmul.f32 %v1900_v48, %v2014_v61  ;;  %v888_v29 = vmul.f32 %v1900_v48, %v2024_v12 }
  0x33   : > { %v781_v31 = vsel %vm468_vm2, %v779_v6, %v780_v17  ;;  %v783_v36 = vsel %vm468_vm2, %v780_v17, %v782_v20  ;;  %v889_v38 = vmul.f32 %v1900_v48, %v1948_v42  ;;  %v1013_v39 = vmul.f32 %v1910_v53, %v2014_v61 }
  0x34   : > { %v823_v40 = vadd.f32 %v781_v31, %v697_v16  ;;  %v824_v43 = vadd.f32 %v783_v36, %v698_v21  ;;  %v943_v49 = vrot.slane %v887_v26, 1  ;;  %v944_v50 = vrot.slane %v888_v29, 1 }
  0x35   : > { %v946_v45 = vrot.slane %v889_v38, 1  ;;  %v1014_v46 = vmul.f32 %v1910_v53, %v2024_v12  ;;  %v1015_v51 = vmul.f32 %v1910_v53, %v1948_v42  ;;  %v1069_v52 = vrot.slane %v1013_v39, 2 }
  0x36   : > { %v861_v55 = vadd.f32 %v845_v11, %v823_v40  ;;  %v862_v56 = vadd.f32 %v846_v22, %v824_v43  ;;  %v945_v57 = vsel %vm341_vm1, %v943_v49, %v944_v50  ;;  %v273_v62 = vmul.f32 %v1813_v2, %v1862_v27 }
  0x37   : > { %v947_v63 = vsel %vm341_vm1, %v944_v50, %v946_v45  ;;  %v1070_v0 = vrot.slane %v1014_v46, 2  ;;  %v1072_v1 = vrot.slane %v1015_v51, 2  ;;  %v274_v5 = vmul.f32 %v1813_v2, %v1872_v33 }
  0x38   : > { %v1621_v6 = vpop.eup %1620  ;;  %v987_v14 = vadd.f32 %v945_v57, %v861_v55  ;;  %v988_v16 = vadd.f32 %v947_v63, %v862_v56  ;;  %v296_v17 = vmul.f32 %v1818_v3, %v1862_v27  ;;  %v297_v11 = vmul.f32 %v1818_v3, %v1872_v33 }
  0x39   : > { %v1623_v20 = vpop.eup %1622  ;;  %v1192_v21 = vadd.f32 1.0, %v1621_v6  ;;  %v1071_v22 = vsel %vm468_vm2, %v1069_v52, %v1070_v0  ;;  %v1073_v26 = vsel %vm468_vm2, %v1070_v0, %v1072_v1  ;;  %v423_v29 = vmul.f32 %v1828_v4, %v1862_v27 }
  0x3a   : > { %v1193_v31 = vadd.f32 1.0, %v1623_v20  ;;  %v1113_v36 = vadd.f32 %v1071_v22, %v987_v14  ;;  %v1114_v38 = vadd.f32 %v1073_v26, %v988_v16  ;;  %v347_v39 = vrot.slane %v296_v17, 1  ;;  %v2090_v22 = vld [vmem:[%s1823_s29 + $0x48] sm:$0xff] }
  0x3b   : > { %1624 = vrcp.f32 %v1192_v21  ;;  %v348_v40 = vrot.slane %v297_v11, 1  ;;  %v424_v43 = vmul.f32 %v1828_v4, %v1872_v33  ;;  %v474_v49 = vrot.slane %v423_v29, 2 }
  0x3c   : > { %1626 = vrcp.f32 %v1193_v31  ;;  %v2060_v50 = vadd.f32 %v1961_v54, %v1113_v36  ;;  %v2063_v45 = vadd.f32 %v1961_v54, %v1114_v38  ;;  %v549_v27 = vmul.f32 %v1850_v18, %v1913_v58  ;;  %v2096_v36 = vld [vmem:[%s1823_s29 + $0x50] sm:$0xff] }
  0x3d   : > { %v349_v46 = vsel %vm341_vm1, %v347_v39, %v348_v40  ;;  %v351_v51 = vsel %vm341_vm1, %v348_v40, %v350_v24  ;;  %v475_v52 = vrot.slane %v424_v43, 2  ;;  %v550_v33 = vmul.f32 %v1850_v18, %v1916_v59 }
  0x3e   : > { %v1152_v55 = vsub.f32 0.0, %v2060_v50  ;;  %v1153_v56 = vsub.f32 0.0, %v2063_v45  ;;  %v400_v57 = vadd.f32 %v349_v46, %v273_v62  ;;  %v401_v63 = vadd.f32 %v351_v51, %v274_v5 }
  0x3f   : > { %v476_v0 = vsel %vm468_vm2, %v474_v49, %v475_v52  ;;  %v478_v1 = vsel %vm468_vm2, %v475_v52, %v477_v37  ;;  %v588_v15 = vmul.f32 %v1867_v28, %v1913_v58  ;;  %v589_v24 = vmul.f32 %v1867_v28, %v1916_v59 }
  0x40   : > { %v1176_v6 = vmul.f32 1.442695, %v1152_v55  ;;  %v1178_v14 = vmul.f32 1.442695, %v1153_v56  ;;  %v527_v16 = vadd.f32 %v476_v0, %v400_v57  ;;  %v528_v62 = vadd.f32 %v478_v1, %v401_v63  ;;  %v2107_v56 = vld [vmem:[%s1823_s29 + $0x58] sm:$0x3] }
  0x41   : > { %v590_v5 = vmul.f32 %v1867_v28, %v1839_v13  ;;  %v638_v17 = vrot.slane %v588_v15, 1  ;;  %v639_v25 = vrot.slane %v589_v24, 1  ;;  %v714_v37 = vmul.f32 %v1877_v34, %v1913_v58 }
  0x42   : > { %1628 = vpow2.f32 %v1176_v6  ;;  %v565_v11 = vadd.f32 %v549_v27, %v527_v16  ;;  %v566_v20 = vadd.f32 %v550_v33, %v528_v62  ;;  %v715_v21 = vmul.f32 %v1877_v34, %v1916_v59 }
  0x43   : > { %1630 = vpow2.f32 %v1178_v14  ;;  %v640_v26 = vsel %vm341_vm1, %v638_v17, %v639_v25  ;;  %v641_v29 = vrot.slane %v590_v5, 1  ;;  %v716_v31 = vmul.f32 %v1877_v34, %v1839_v13 }
  0x44   : > { %v691_v38 = vadd.f32 %v640_v26, %v565_v11  ;;  %v764_v39 = vrot.slane %v714_v37, 2  ;;  %v765_v40 = vrot.slane %v715_v21, 2  ;;  %v839_v43 = vmul.f32 %v1895_v47, %v2090_v22 }
  0x45   : > { %v1625_v49 = vpop.eup %1624  ;;  %v642_v27 = vsel %vm341_vm1, %v639_v25, %v641_v29  ;;  %v767_v46 = vrot.slane %v716_v31, 2  ;;  %v840_v51 = vmul.f32 %v1895_v47, %v2096_v36  ;;  %v878_v52 = vmul.f32 %v1900_v48, %v2090_v22 }
  0x46   : > { %v1627_v33 = vpop.eup %1626  ;;  %v1224_v55 = vmul.f32 %v1625_v49, %v1979_v8  ;;  %v692_v57 = vadd.f32 %v642_v27, %v566_v20  ;;  %v766_v63 = vsel %vm468_vm2, %v764_v39, %v765_v40  ;;  %v879_v0 = vmul.f32 %v1900_v48, %v2096_v36 }
  0x47   : > { %v1225_v1 = vmul.f32 %v1627_v33, %v1982_v9  ;;  %v768_v15 = vsel %vm468_vm2, %v765_v40, %v767_v46  ;;  %v817_v24 = vadd.f32 %v766_v63, %v691_v38  ;;  %v880_v6 = vmul.f32 %v1900_v48, %v2107_v56 }
  0x48   : > { %v818_v14 = vadd.f32 %v768_v15, %v692_v57  ;;  %v928_v16 = vrot.slane %v878_v52, 1  ;;  %v929_v62 = vrot.slane %v879_v0, 1  ;;  %v1004_v8 = vmul.f32 %v1910_v53, %v2090_v22 }
  0x49   : > { %v1241_v5 = vpack.c.bf16 %v1225_v1, %v1224_v55  ;;  %v855_v17 = vadd.f32 %v839_v43, %v817_v24  ;;  %v931_v25 = vrot.slane %v880_v6, 1  ;;  %v1005_v37 = vmul.f32 %v1910_v53, %v2096_v36 }
  0x4a   : > { %v856_v11 = vadd.f32 %v840_v51, %v818_v14  ;;  %v930_v9 = vsel %vm341_vm1, %v928_v16, %v929_v62  ;;  %v1006_v20 = vmul.f32 %v1910_v53, %v2107_v56  ;;  %v1054_v21 = vrot.slane %v1004_v8, 2 }
  0x4b   : > { %1591 = vmatprep.mubr.msk.bf16.mxu0 %vm1256_vm3, %v1241_v5  ;;  %v932_v26 = vsel %vm341_vm1, %v929_v62, %v931_v25  ;;  %v981_v29 = vadd.f32 %v930_v9, %v855_v17  ;;  %v1055_v31 = vrot.slane %v1005_v37, 2  ;;  %v281_v38 = vmul.f32 %v1813_v2, %v1985_v10 }
  0x4c   : > { %v1629_v39 = vpop.eup %1628  ;;  %v982_v40 = vadd.f32 %v932_v26, %v856_v11  ;;  %v1057_v43 = vrot.slane %v1006_v20, 2  ;;  %v282_v49 = vmul.f32 %v1813_v2, %v1996_v23  ;;  %v308_v27 = vmul.f32 %v1818_v3, %v1985_v10 }
  0x4d   : > { %v1631_v46 = vpop.eup %1630  ;;  %v1200_v51 = vadd.f32 1.0, %v1629_v39  ;;  %v1056_v52 = vsel %vm468_vm2, %v1054_v21, %v1055_v31  ;;  %v309_v33 = vmul.f32 %v1818_v3, %v1996_v23  ;;  %v310_v55 = vmul.f32 %v1818_v3, %v2004_v44 }
  0x4e   : > { %v1201_v57 = vadd.f32 1.0, %v1631_v46  ;;  %v1058_v63 = vsel %vm468_vm2, %v1055_v31, %v1057_v43  ;;  %v1107_v0 = vadd.f32 %v1056_v52, %v981_v29  ;;  %v367_v1 = vrot.slane %v308_v27, 1 }
  0x4f   : > { %1632 = vrcp.f32 %v1200_v51  ;;  %v1108_v15 = vadd.f32 %v1058_v63, %v982_v40  ;;  %v368_v24 = vrot.slane %v309_v33, 1  ;;  %v370_v6 = vrot.slane %v310_v55, 1 }
  0x50   : > { %1634 = vrcp.f32 %v1201_v57  ;;  %v2138_v14 = vadd.f32 %v1961_v54, %v1107_v0  ;;  %v435_v16 = vmul.f32 %v1828_v4, %v1985_v10  ;;  %v436_v62 = vmul.f32 %v1828_v4, %v1996_v23 }
  0x51   : > { %v2145_v8 = vadd.f32 %v1961_v54, %v1108_v15  ;;  %v369_v5 = vsel %vm341_vm1, %v367_v1, %v368_v24  ;;  %v371_v17 = vsel %vm341_vm1, %v368_v24, %v370_v6  ;;  %v437_v25 = vmul.f32 %v1828_v4, %v2004_v44  ;;  %v2168_v1 = vld [vmem:[%s1823_s29 + $0xa8] sm:$0xff] }
  0x52   : > { %v1146_v37 = vsub.f32 0.0, %v2138_v14  ;;  %v408_v11 = vadd.f32 %v369_v5, %v281_v38  ;;  %v409_v9 = vadd.f32 %v371_v17, %v282_v49  ;;  %v494_v20 = vrot.slane %v435_v16, 2 }
  0x53   : > { %v1147_v21 = vsub.f32 0.0, %v2145_v8  ;;  %v495_v26 = vrot.slane %v436_v62, 2  ;;  %v497_v29 = vrot.slane %v437_v25, 2  ;;  %v557_v31 = vmul.f32 %v1850_v18, %v2014_v61 }
  0x54   : > { %v1164_v39 = vmul.f32 1.442695, %v1146_v37  ;;  %v558_v40 = vmul.f32 %v1850_v18, %v2024_v12  ;;  %v600_v43 = vmul.f32 %v1867_v28, %v2014_v61  ;;  %v601_v38 = vmul.f32 %v1867_v28, %v2024_v12 }
  0x55   : > { %v1166_v49 = vmul.f32 1.442695, %v1147_v21  ;;  %v496_v27 = vsel %vm468_vm2, %v494_v20, %v495_v26  ;;  %v498_v46 = vsel %vm468_vm2, %v495_v26, %v497_v29  ;;  %v602_v51 = vmul.f32 %v1867_v28, %v1948_v42  ;;  %v2180_v20 = vld [vmem:[%s1823_s29 + $0xb0] sm:$0xff] }
  0x56   : > { %1636 = vpow2.f32 %v1164_v39  ;;  %v535_v52 = vadd.f32 %v496_v27, %v408_v11  ;;  %v536_v33 = vadd.f32 %v498_v46, %v409_v9  ;;  %v658_v55 = vrot.slane %v600_v43, 1  ;;  %v2184_v39 = vld [vmem:[%s1823_s29 + $0xb8] sm:$0x3] }
  0x57   : > { %1638 = vpow2.f32 %v1166_v49  ;;  %v659_v57 = vrot.slane %v601_v38, 1  ;;  %v661_v63 = vrot.slane %v602_v51, 1  ;;  %v726_v0 = vmul.f32 %v1877_v34, %v2014_v61 }
  0x58   : > { %v573_v15 = vadd.f32 %v557_v31, %v535_v52  ;;  %v574_v24 = vadd.f32 %v558_v40, %v536_v33  ;;  %v727_v6 = vmul.f32 %v1877_v34, %v2024_v12  ;;  %v728_v16 = vmul.f32 %v1877_v34, %v1948_v42 }
  0x59   : > { %v1633_v62 = vpop.eup %1632  ;;  %v660_v5 = vsel %vm341_vm1, %v658_v55, %v659_v57  ;;  %v662_v17 = vsel %vm341_vm1, %v659_v57, %v661_v63  ;;  %v784_v25 = vrot.slane %v726_v0, 2  ;;  %v847_v37 = vmul.f32 %v1895_v47, %v2168_v1 }
  0x5a   : > { %v1635_v11 = vpop.eup %1634  ;;  %v1232_v9 = vmul.f32 %v1633_v62, %v2060_v50  ;;  %v699_v21 = vadd.f32 %v660_v5, %v573_v15  ;;  %v700_v26 = vadd.f32 %v662_v17, %v574_v24  ;;  %v785_v29 = vrot.slane %v727_v6, 2 }
  0x5b   : > { %v1233_v31 = vmul.f32 %v1635_v11, %v2063_v45  ;;  %v787_v40 = vrot.slane %v728_v16, 2  ;;  %v848_v43 = vmul.f32 %v1895_v47, %v2180_v20  ;;  %v890_v38 = vmul.f32 %v1900_v48, %v2168_v1 }
  0x5c   : > { %v786_v49 = vsel %vm468_vm2, %v784_v25, %v785_v29  ;;  %v891_v50 = vmul.f32 %v1900_v48, %v2180_v20  ;;  %v892_v27 = vmul.f32 %v1900_v48, %v2184_v39  ;;  %v1016_v45 = vmul.f32 %v1910_v53, %v2168_v1 }
  0x5d   : > { %v1245_v46 = vpack.c.bf16 %v1233_v31, %v1232_v9  ;;  %v788_v51 = vsel %vm468_vm2, %v785_v29, %v787_v40  ;;  %v825_v52 = vadd.f32 %v786_v49, %v699_v21  ;;  %v948_v33 = vrot.slane %v890_v38, 1 }
  0x5e   : > { %v826_v55 = vadd.f32 %v788_v51, %v700_v26  ;;  %v949_v57 = vrot.slane %v891_v50, 1  ;;  %v951_v63 = vrot.slane %v892_v27, 1  ;;  %v1017_v0 = vmul.f32 %v1910_v53, %v2180_v20 }
  0x5f   : > { %1599 = vmatprep.mubr.msk.bf16.mxu1 %vm1256_vm3, %v1245_v46  ;;  %v863_v15 = vadd.f32 %v847_v37, %v825_v52  ;;  %v1018_v24 = vmul.f32 %v1910_v53, %v2184_v39  ;;  %v1074_v6 = vrot.slane %v1016_v45, 2  ;;  %v275_v16 = vmul.f32 %v1813_v2, %v1913_v58 }
  0x60   : > { %v1637_v62 = vpop.eup %1636  ;;  %v864_v5 = vadd.f32 %v848_v43, %v826_v55  ;;  %v950_v17 = vsel %vm341_vm1, %v948_v33, %v949_v57  ;;  %v952_v25 = vsel %vm341_vm1, %v949_v57, %v951_v63  ;;  %v1075_v11 = vrot.slane %v1017_v0, 2 }
  0x61   : > { %v1639_v9 = vpop.eup %1638  ;;  %v1194_v21 = vadd.f32 1.0, %v1637_v62  ;;  %v989_v26 = vadd.f32 %v950_v17, %v863_v15  ;;  %v1077_v29 = vrot.slane %v1018_v24, 2  ;;  %v276_v37 = vmul.f32 %v1813_v2, %v1916_v59 }
  0x62   : > { %v1195_v31 = vadd.f32 1.0, %v1639_v9  ;;  %v990_v40 = vadd.f32 %v952_v25, %v864_v5  ;;  %v1076_v38 = vsel %vm468_vm2, %v1074_v6, %v1075_v11  ;;  %v299_v49 = vmul.f32 %v1818_v3, %v1913_v58 }
  0x63   : > { %1640 = vrcp.f32 %v1194_v21  ;;  %v1078_v43 = vsel %vm468_vm2, %v1075_v11, %v1077_v29  ;;  %v1115_v50 = vadd.f32 %v1076_v38, %v989_v26  ;;  %v300_v27 = vmul.f32 %v1818_v3, %v1916_v59 }
  0x64   : > { %1642 = vrcp.f32 %v1195_v31  ;;  %v1116_v45 = vadd.f32 %v1078_v43, %v990_v40  ;;  %v352_v46 = vrot.slane %v299_v49, 1  ;;  %v426_v51 = vmul.f32 %v1828_v4, %v1913_v58 }
  0x65   : > { %v2218_v52 = vadd.f32 %v1961_v54, %v1115_v50  ;;  %v353_v33 = vrot.slane %v300_v27, 1  ;;  %v427_v55 = vmul.f32 %v1828_v4, %v1916_v59  ;;  %v428_v57 = vmul.f32 %v1828_v4, %v1839_v13 }
  0x66   : > { %v2225_v63 = vadd.f32 %v1961_v54, %v1116_v45  ;;  %v479_v0 = vrot.slane %v426_v51, 2  ;;  %v551_v15 = vmul.f32 %v1850_v18, %v2090_v22  ;;  %v552_v58 = vmul.f32 %v1850_v18, %v2096_v36 }
  0x67   : > { %v1154_v24 = vsub.f32 0.0, %v2218_v52  ;;  %v354_v6 = vsel %vm341_vm1, %v352_v46, %v353_v33  ;;  %v356_v59 = vsel %vm341_vm1, %v353_v33, %v355_v30  ;;  %v480_v62 = vrot.slane %v427_v55, 2 }
  0x68   : > { %v1155_v13 = vsub.f32 0.0, %v2225_v63  ;;  %v402_v5 = vadd.f32 %v354_v6, %v275_v16  ;;  %v403_v17 = vadd.f32 %v356_v59, %v276_v37  ;;  %v482_v25 = vrot.slane %v428_v57, 2 }
  0x69   : > { %v1180_v11 = vmul.f32 1.442695, %v1154_v24  ;;  %v481_v9 = vsel %vm468_vm2, %v479_v0, %v480_v62  ;;  %v591_v21 = vmul.f32 %v1867_v28, %v2090_v22  ;;  %v592_v26 = vmul.f32 %v1867_v28, %v2096_v36 }
  0x6a   : > { %v1182_v29 = vmul.f32 1.442695, %v1155_v13  ;;  %v483_v19 = vsel %vm468_vm2, %v480_v62, %v482_v25  ;;  %v529_v31 = vadd.f32 %v481_v9, %v402_v5  ;;  %v593_v30 = vmul.f32 %v1867_v28, %v2107_v56 }
  0x6b   : > { %1644 = vpow2.f32 %v1180_v11  ;;  %v530_v16 = vadd.f32 %v483_v19, %v403_v17  ;;  %v643_v37 = vrot.slane %v591_v21, 1  ;;  %v644_v40 = vrot.slane %v592_v26, 1 }
  0x6c   : > { %1646 = vpow2.f32 %v1182_v29  ;;  %v567_v38 = vadd.f32 %v551_v15, %v529_v31  ;;  %v646_v49 = vrot.slane %v593_v30, 1  ;;  %v717_v43 = vmul.f32 %v1877_v34, %v2090_v22 }
  0x6d   : > { %v1641_v50 = vpop.eup %1640  ;;  %v568_v27 = vadd.f32 %v552_v58, %v530_v16  ;;  %v645_v45 = vsel %vm341_vm1, %v643_v37, %v644_v40  ;;  %v718_v46 = vmul.f32 %v1877_v34, %v2096_v36  ;;  %v719_v51 = vmul.f32 %v1877_v34, %v2107_v56 }
  0x6e   : > { %v1643_v33 = vpop.eup %1642  ;;  %v1226_v55 = vmul.f32 %v1641_v50, %v2138_v14  ;;  %v647_v57 = vsel %vm341_vm1, %v644_v40, %v646_v49  ;;  %v693_v0 = vadd.f32 %v645_v45, %v567_v38  ;;  %v769_v15 = vrot.slane %v717_v43, 2 }
  0x6f   : > { %v1227_v24 = vmul.f32 %v1643_v33, %v2145_v8  ;;  %v694_v6 = vadd.f32 %v647_v57, %v568_v27  ;;  %v770_v59 = vrot.slane %v718_v46, 2  ;;  %v772_v58 = vrot.slane %v719_v51, 2 }
  0x70   : > { %v841_v62 = vmul.f32 %v1895_v47, %v1939_v32  ;;  %v842_v13 = vmul.f32 %v1895_v47, %v1942_v35  ;;  %v881_v5 = vmul.f32 %v1900_v48, %v1939_v32  ;;  %v882_v14 = vmul.f32 %v1900_v48, %v1942_v35 }
  0x71   : > { %v1242_v17 = vpack.c.bf16 %v1227_v24, %v1226_v55  ;;  %v771_v25 = vsel %vm468_vm2, %v769_v15, %v770_v59  ;;  %v773_v8 = vsel %vm468_vm2, %v770_v59, %v772_v58  ;;  %v883_v11 = vmul.f32 %v1900_v48, %v1945_v41 }
  0x72   : > { %v819_v9 = vadd.f32 %v771_v25, %v693_v0  ;;  %v820_v21 = vadd.f32 %v773_v8, %v694_v6  ;;  %v933_v26 = vrot.slane %v881_v5, 1  ;;  %v934_v29 = vrot.slane %v882_v14, 1 }
  0x73   : > { %1592 = vmatmul.mubr.msk.bf16.vlgmr.msra.gmra.mrb[0].mxu0 %vm1256_vm3, %v1242_v17  ;;  %v936_v19 = vrot.slane %v883_v11, 1  ;;  %v1007_v31 = vmul.f32 %v1910_v53, %v1939_v32  ;;  %v1008_v30 = vmul.f32 %v1910_v53, %v1942_v35  ;;  %v1009_v16 = vmul.f32 %v1910_v53, %v1945_v41 }
  0x74   : > { %v857_v37 = vadd.f32 %v841_v62, %v819_v9  ;;  %v858_v40 = vadd.f32 %v842_v13, %v820_v21  ;;  %v935_v38 = vsel %vm341_vm1, %v933_v26, %v934_v29  ;;  %v283_v49 = vmul.f32 %v1813_v2, %v2014_v61 }
  0x75   : > { %v1645_v43 = vpop.eup %1644  ;;  %v937_v50 = vsel %vm341_vm1, %v934_v29, %v936_v19  ;;  %v1059_v27 = vrot.slane %v1007_v31, 2  ;;  %v1060_v45 = vrot.slane %v1008_v30, 2  ;;  %v1062_v46 = vrot.slane %v1009_v16, 2 }
  0x76   : > { %v1647_v51 = vpop.eup %1646  ;;  %v1202_v33 = vadd.f32 1.0, %v1645_v43  ;;  %v983_v55 = vadd.f32 %v935_v38, %v857_v37  ;;  %v984_v57 = vadd.f32 %v937_v50, %v858_v40  ;;  %v284_v0 = vmul.f32 %v1813_v2, %v2024_v12 }
  0x77   : > { %v1203_v15 = vadd.f32 1.0, %v1647_v51  ;;  %v1061_v24 = vsel %vm468_vm2, %v1059_v27, %v1060_v45  ;;  %v1063_v6 = vsel %vm468_vm2, %v1060_v45, %v1062_v46  ;;  %v311_v59 = vmul.f32 %v1818_v3, %v2014_v61 }
  0x78   : > { %1648 = vrcp.f32 %v1202_v33  ;;  %v1109_v58 = vadd.f32 %v1061_v24, %v983_v55  ;;  %v1110_v62 = vadd.f32 %v1063_v6, %v984_v57  ;;  %v312_v13 = vmul.f32 %v1818_v3, %v2024_v12  ;;  %v2325_v6 = vld [vmem:[%s1823_s29 + $0xc0] sm:$0xff] }
  0x79   : > { %1650 = vrcp.f32 %v1203_v15  ;;  %v372_v5 = vrot.slane %v311_v59, 1  ;;  %v438_v14 = vmul.f32 %v1828_v4, %v2014_v61  ;;  %v439_v2 = vmul.f32 %v1828_v4, %v2024_v12 }
  0x7a   : > { %v2291_v17 = vadd.f32 %v1961_v54, %v1109_v58  ;;  %v2294_v25 = vadd.f32 %v1961_v54, %v1110_v62  ;;  %v373_v8 = vrot.slane %v312_v13, 1  ;;  %v440_v11 = vmul.f32 %v1828_v4, %v1948_v42 }
  0x7b   : > { %v499_v9 = vrot.slane %v438_v14, 2  ;;  %v500_v3 = vrot.slane %v439_v2, 2  ;;  %v559_v21 = vmul.f32 %v1850_v18, %v2168_v1  ;;  %v560_v61 = vmul.f32 %v1850_v18, %v2180_v20 }
  0x7c   : > { %v1148_v12 = vsub.f32 0.0, %v2291_v17  ;;  %v1149_v26 = vsub.f32 0.0, %v2294_v25  ;;  %v374_v29 = vsel %vm341_vm1, %v372_v5, %v373_v8  ;;  %v376_v19 = vsel %vm341_vm1, %v373_v8, %v375_v7  ;;  %v2330_v5 = vld [vmem:[%s1823_s29 + $0xc8] sm:$0xff] }
  0x7d   : > { %v410_v31 = vadd.f32 %v374_v29, %v283_v49  ;;  %v411_v4 = vadd.f32 %v376_v19, %v284_v0  ;;  %v501_v42 = vsel %vm468_vm2, %v499_v9, %v500_v3  ;;  %v502_v30 = vrot.slane %v440_v11, 2 }
  0x7e   : > { %v1168_v16 = vmul.f32 1.442695, %v1148_v12  ;;  %v1170_v37 = vmul.f32 1.442695, %v1149_v26  ;;  %v603_v18 = vmul.f32 %v1867_v28, %v2168_v1  ;;  %v604_v40 = vmul.f32 %v1867_v28, %v2180_v20 }
  0x7f   : > { %v503_v38 = vsel %vm468_vm2, %v500_v3, %v502_v30  ;;  %v537_v43 = vadd.f32 %v501_v42, %v410_v31  ;;  %v605_v60 = vmul.f32 %v1867_v28, %v2184_v39  ;;  %v729_v7 = vmul.f32 %v1877_v34, %v2168_v1 }
  0x80   : > { %1652 = vpow2.f32 %v1168_v16  ;;  %v538_v49 = vadd.f32 %v503_v38, %v411_v4  ;;  %v663_v50 = vrot.slane %v603_v18, 1  ;;  %v664_v27 = vrot.slane %v604_v40, 1  ;;  %v2358_v18 = vld [vmem:[%s2614_s1] ss:$0 sm:$0xff] }
  0x81   : > { %1654 = vpow2.f32 %v1170_v37  ;;  %v575_v45 = vadd.f32 %v559_v21, %v537_v43  ;;  %v666_v46 = vrot.slane %v605_v60, 1  ;;  %v730_v51 = vmul.f32 %v1877_v34, %v2180_v20 }
  0x82   : > { %v1649_v33 = vpop.eup %1648  ;;  %v576_v55 = vadd.f32 %v560_v61, %v538_v49  ;;  %v665_v28 = vsel %vm341_vm1, %v663_v50, %v664_v27  ;;  %v731_v57 = vmul.f32 %v1877_v34, %v2184_v39  ;;  %v789_v0 = vrot.slane %v729_v7, 2  ;;  %v2335_v34 = vld [vmem:[%s1823_s29 + $0xd0] sm:$0x3] }
  0x83   : > { %v1651_v15 = vpop.eup %1650  ;;  %v1234_v24 = vmul.f32 %v1649_v33, %v2218_v52  ;;  %v667_v59 = vsel %vm341_vm1, %v664_v27, %v666_v46  ;;  %v701_v58 = vadd.f32 %v665_v28, %v575_v45  ;;  %v790_v62 = vrot.slane %v730_v51, 2  ;;  %v2368_v46 = vld [vmem:[%s2614_s1 + $0x1] ss:$0 sm:$0xff] }
  0x84   : > { %v1235_v13 = vmul.f32 %v1651_v15, %v2225_v63  ;;  %v702_v14 = vadd.f32 %v667_v59, %v576_v55  ;;  %v792_v2 = vrot.slane %v731_v57, 2  ;;  %v849_v8 = vmul.f32 %v1895_v47, %v2325_v6 }
  0x85   : > { %v791_v11 = vsel %vm468_vm2, %v789_v0, %v790_v62  ;;  %v850_v52 = vmul.f32 %v1895_v47, %v2330_v5  ;;  %v893_v9 = vmul.f32 %v1900_v48, %v2325_v6  ;;  %v894_v63 = vmul.f32 %v1900_v48, %v2330_v5 }
  0x86   : > { %v1246_v3 = vpack.c.bf16 %v1235_v13, %v1234_v24  ;;  %v793_v21 = vsel %vm468_vm2, %v790_v62, %v792_v2  ;;  %v827_v61 = vadd.f32 %v791_v11, %v701_v58  ;;  %v895_v12 = vmul.f32 %v1900_v48, %v2335_v34  ;;  %v2381_v62 = vld [vmem:[%s2614_s1 + $0x2] ss:$0 sm:$0xff] }
  0x87   : > { %v828_v26 = vadd.f32 %v793_v21, %v702_v14  ;;  %v953_v29 = vrot.slane %v893_v9, 1  ;;  %v954_v19 = vrot.slane %v894_v63, 1  ;;  %v1019_v31 = vmul.f32 %v1910_v53, %v2325_v6 }
  0x88   : > { %1600 = vmatmul.mubr.msk.bf16.vlgmr.msra.gmra.mrb[0].mxu1 %vm1256_vm3, %v1246_v3  ;;  %v865_v47 = vadd.f32 %v849_v8, %v827_v61  ;;  %v956_v4 = vrot.slane %v895_v12, 1  ;;  %v1020_v42 = vmul.f32 %v1910_v53, %v2330_v5  ;;  %v1021_v30 = vmul.f32 %v1910_v53, %v2335_v34 }
  0x89   : > { %v866_v16 = vadd.f32 %v850_v52, %v828_v26  ;;  %v955_v37 = vsel %vm341_vm1, %v953_v29, %v954_v19  ;;  %v1079_v48 = vrot.slane %v1019_v31, 2  ;;  %v277_v40 = vmul.f32 %v2358_v18, %v2090_v22 }
  0x8a   : > { %v1653_v38 = vpop.eup %1652  ;;  %v957_v43 = vsel %vm341_vm1, %v954_v19, %v956_v4  ;;  %v991_v60 = vadd.f32 %v955_v37, %v865_v47  ;;  %v1080_v7 = vrot.slane %v1020_v42, 2  ;;  %v1082_v49 = vrot.slane %v1021_v30, 2  ;;  %v2411_v47 = vld [vmem:[%s2614_s1 + $0x4] ss:$0 sm:$0xff] }
  0x8b   : > { %v1655_v50 = vpop.eup %1654  ;;  %v1196_v53 = vadd.f32 1.0, %v1653_v38  ;;  %v992_v27 = vadd.f32 %v957_v43, %v866_v16  ;;  %v278_v45 = vmul.f32 %v2358_v18, %v2096_v36  ;;  %v302_v51 = vmul.f32 %v2368_v46, %v2090_v22 }
  0x8c   : > { %v1197_v33 = vadd.f32 1.0, %v1655_v50  ;;  %v1081_v55 = vsel %vm468_vm2, %v1079_v48, %v1080_v7  ;;  %v1083_v28 = vsel %vm468_vm2, %v1080_v7, %v1082_v49  ;;  %v303_v57 = vmul.f32 %v2368_v46, %v2096_v36  ;;  %v2424_v48 = vld [vmem:[%s2614_s1 + $0x5] ss:$0 sm:$0xff] }
  0x8d   : > { %1656 = vrcp.f32 %v1196_v53  ;;  %v1117_v0 = vadd.f32 %v1081_v55, %v991_v60  ;;  %v1118_v15 = vadd.f32 %v1083_v28, %v992_v27  ;;  %v304_v24 = vmul.f32 %v2368_v46, %v2107_v56 }
  0x8e   : > { %1658 = vrcp.f32 %v1197_v33  ;;  %v357_v59 = vrot.slane %v302_v51, 1  ;;  %v358_v58 = vrot.slane %v303_v57, 1  ;;  %v429_v13 = vmul.f32 %v2381_v62, %v2090_v22  ;;  %v2399_v22 = vld [vmem:[%s2614_s1 + $0x3] ss:$0 sm:$0xff] }
  0x8f   : > { %v2386_v14 = vadd.f32 %v1961_v54, %v1117_v0  ;;  %v2389_v2 = vadd.f32 %v1961_v54, %v1118_v15  ;;  %v360_v8 = vrot.slane %v304_v24, 1  ;;  %v430_v11 = vmul.f32 %v2381_v62, %v2096_v36 }
  0x90   : > { %v359_v52 = vsel %vm341_vm1, %v357_v59, %v358_v58  ;;  %v431_v9 = vmul.f32 %v2381_v62, %v2107_v56  ;;  %v484_v63 = vrot.slane %v429_v13, 2  ;;  %v553_v3 = vmul.f32 %v2399_v22, %v1939_v32 }
  0x91   : > { %v1156_v54 = vsub.f32 0.0, %v2386_v14  ;;  %v1157_v21 = vsub.f32 0.0, %v2389_v2  ;;  %v361_v36 = vsel %vm341_vm1, %v358_v58, %v360_v8  ;;  %v404_v61 = vadd.f32 %v359_v52, %v277_v40 }
  0x92   : > { %v405_v12 = vadd.f32 %v361_v36, %v278_v45  ;;  %v485_v26 = vrot.slane %v430_v11, 2  ;;  %v487_v29 = vrot.slane %v431_v9, 2  ;;  %v554_v56 = vmul.f32 %v2399_v22, %v1942_v35  ;;  %v2461_v36 = vld [vmem:[%s2614_s1 + $0x8] ss:$0 sm:$0xff] }
  0x93   : > { %v1184_v19 = vmul.f32 1.442695, %v1156_v54  ;;  %v1186_v31 = vmul.f32 1.442695, %v1157_v21  ;;  %v594_v4 = vmul.f32 %v2411_v47, %v1939_v32  ;;  %v595_v42 = vmul.f32 %v2411_v47, %v1942_v35 }
  0x94   : > { %v486_v30 = vsel %vm468_vm2, %v484_v63, %v485_v26  ;;  %v488_v16 = vsel %vm468_vm2, %v485_v26, %v487_v29  ;;  %v596_v37 = vmul.f32 %v2411_v47, %v1945_v41  ;;  %v720_v40 = vmul.f32 %v2424_v48, %v1939_v32 }
  0x95   : > { %1660 = vpow2.f32 %v1184_v19  ;;  %v531_v38 = vadd.f32 %v486_v30, %v404_v61  ;;  %v532_v43 = vadd.f32 %v488_v16, %v405_v12  ;;  %v648_v60 = vrot.slane %v594_v4, 1 }
  0x96   : > { %1662 = vpow2.f32 %v1186_v31  ;;  %v649_v7 = vrot.slane %v595_v42, 1  ;;  %v651_v49 = vrot.slane %v596_v37, 1  ;;  %v721_v50 = vmul.f32 %v2424_v48, %v1942_v35 }
  0x97   : > { %v1657_v53 = vpop.eup %1656  ;;  %v569_v27 = vadd.f32 %v553_v3, %v531_v38  ;;  %v570_v45 = vadd.f32 %v554_v56, %v532_v43  ;;  %v722_v51 = vmul.f32 %v2424_v48, %v1945_v41  ;;  %v774_v33 = vrot.slane %v720_v40, 2  ;;  %v2440_v41 = vld [vmem:[%s2614_s1 + $0x6] ss:$0 sm:$0xff] }
  0x98   : > { %v1659_v55 = vpop.eup %1658  ;;  %v1228_v32 = vmul.f32 %v1657_v53, %v2291_v17  ;;  %v650_v28 = vsel %vm341_vm1, %v648_v60, %v649_v7  ;;  %v652_v57 = vsel %vm341_vm1, %v649_v7, %v651_v49  ;;  %v775_v0 = vrot.slane %v721_v50, 2 }
  0x99   : > { %v1229_v15 = vmul.f32 %v1659_v55, %v2294_v25  ;;  %v695_v24 = vadd.f32 %v650_v28, %v569_v27  ;;  %v696_v59 = vadd.f32 %v652_v57, %v570_v45  ;;  %v777_v35 = vrot.slane %v722_v51, 2  ;;  %v2449_v25 = vld [vmem:[%s2614_s1 + $0x7] ss:$0 sm:$0xff] }
  0x9a   : > { %v776_v58 = vsel %vm468_vm2, %v774_v33, %v775_v0  ;;  %v843_v17 = vmul.f32 %v2440_v41, %v1985_v10  ;;  %v844_v13 = vmul.f32 %v2440_v41, %v1996_v23  ;;  %v884_v8 = vmul.f32 %v2449_v25, %v1985_v10 }
  0x9b   : > { %v1243_v11 = vpack.c.bf16 %v1229_v15, %v1228_v32  ;;  %v778_v52 = vsel %vm468_vm2, %v775_v0, %v777_v35  ;;  %v821_v9 = vadd.f32 %v776_v58, %v695_v24  ;;  %v885_v63 = vmul.f32 %v2449_v25, %v1996_v23  ;;  %v2489_v32 = vld [vmem:[%s2615_s2] ss:$0 sm:$0xff] }
  0x9c   : > { %v822_v3 = vadd.f32 %v778_v52, %v696_v59  ;;  %v886_v54 = vmul.f32 %v2449_v25, %v2004_v44  ;;  %v938_v21 = vrot.slane %v884_v8, 1  ;;  %v1010_v61 = vmul.f32 %v2461_v36, %v1985_v10 }
  0x9d   : > { %1595 = vmatprep.mubr.msk.bf16.mxu0 %vm1256_vm3, %v1243_v11  ;;  %v859_v12 = vadd.f32 %v843_v17, %v821_v9  ;;  %v939_v26 = vrot.slane %v885_v63, 1  ;;  %v1011_v29 = vmul.f32 %v2461_v36, %v1996_v23  ;;  %v1012_v56 = vmul.f32 %v2461_v36, %v2004_v44 }
  0x9e   : > { %v860_v19 = vadd.f32 %v844_v13, %v822_v3  ;;  %v941_v31 = vrot.slane %v886_v54, 1  ;;  %v1064_v4 = vrot.slane %v1010_v61, 2  ;;  %v285_v42 = vmul.f32 %v2358_v18, %v2168_v1 }
  0x9f   : > { %v1661_v30 = vpop.eup %1660  ;;  %v940_v16 = vsel %vm341_vm1, %v938_v21, %v939_v26  ;;  %v1065_v10 = vrot.slane %v1011_v29, 2  ;;  %v1067_v37 = vrot.slane %v1012_v56, 2  ;;  %v286_v40 = vmul.f32 %v2358_v18, %v2180_v20 }
  0xa0   : > { %v1663_v38 = vpop.eup %1662  ;;  %v1204_v43 = vadd.f32 1.0, %v1661_v30  ;;  %v942_v23 = vsel %vm341_vm1, %v939_v26, %v941_v31  ;;  %v985_v60 = vadd.f32 %v940_v16, %v859_v12  ;;  %v314_v44 = vmul.f32 %v2368_v46, %v2168_v1  ;;  %v253_v12 = vld [vmem:[%s1823_s29 + $0xd8] sm:$0xff] }
  0xa1   : > { %v1205_v7 = vadd.f32 1.0, %v1663_v38  ;;  %v986_v49 = vadd.f32 %v942_v23, %v860_v19  ;;  %v1066_v50 = vsel %vm468_vm2, %v1064_v4, %v1065_v10  ;;  %v1068_v53 = vsel %vm468_vm2, %v1065_v10, %v1067_v37  ;;  %v255_v38 = vld [vmem:[%s1823_s29 + $0xe8] sm:$0x3] }
  0xa2   : > { %1664 = vrcp.f32 %v1204_v43  ;;  %v1111_v27 = vadd.f32 %v1066_v50, %v985_v60  ;;  %v315_v45 = vmul.f32 %v2368_v46, %v2180_v20  ;;  %v316_v18 = vmul.f32 %v2368_v46, %v2184_v39 }
  0xa3   : > { %1666 = vrcp.f32 %v1205_v7  ;;  %v1112_v51 = vadd.f32 %v1068_v53, %v986_v49  ;;  %v377_v33 = vrot.slane %v314_v44, 1  ;;  %v441_v55 = vmul.f32 %v2381_v62, %v2168_v1 }
  0xa4   : > { %v2492_v28 = vadd.f32 %v2489_v32, %v1111_v27  ;;  %v378_v57 = vrot.slane %v315_v45, 1  ;;  %v380_v0 = vrot.slane %v316_v18, 1  ;;  %v442_v15 = vmul.f32 %v2381_v62, %v2180_v20 }
  0xa5   : > { %v2497_v46 = vadd.f32 %v2489_v32, %v1112_v51  ;;  %v443_v24 = vmul.f32 %v2381_v62, %v2184_v39  ;;  %v504_v1 = vrot.slane %v441_v55, 2  ;;  %v561_v59 = vmul.f32 %v2399_v22, %v2325_v6 }
  0xa6   : > { %v1150_v35 = vsub.f32 0.0, %v2492_v28  ;;  %v379_v58 = vsel %vm341_vm1, %v377_v33, %v378_v57  ;;  %v381_v17 = vsel %vm341_vm1, %v378_v57, %v380_v0  ;;  %v505_v13 = vrot.slane %v442_v15, 2 }
  0xa7   : > { %v1151_v20 = vsub.f32 0.0, %v2497_v46  ;;  %v412_v8 = vadd.f32 %v379_v58, %v285_v42  ;;  %v413_v11 = vadd.f32 %v381_v17, %v286_v40  ;;  %v507_v52 = vrot.slane %v443_v24, 2  ;;  %v254_v42 = vld [vmem:[%s1823_s29 + $0xe0] sm:$0xff] }
  0xa8   : > { %v1172_v9 = vmul.f32 1.442695, %v1150_v35  ;;  %v506_v39 = vsel %vm468_vm2, %v504_v1, %v505_v13  ;;  %v562_v62 = vmul.f32 %v2399_v22, %v2330_v5  ;;  %v606_v63 = vmul.f32 %v2411_v47, %v2325_v6 }
  0xa9   : > { %v1174_v3 = vmul.f32 1.442695, %v1151_v20  ;;  %v508_v54 = vsel %vm468_vm2, %v505_v13, %v507_v52  ;;  %v539_v21 = vadd.f32 %v506_v39, %v412_v8  ;;  %v607_v61 = vmul.f32 %v2411_v47, %v2330_v5 }
  0xaa   : > { %1668 = vpow2.f32 %v1172_v9  ;;  %v540_v26 = vadd.f32 %v508_v54, %v413_v11  ;;  %v608_v29 = vmul.f32 %v2411_v47, %v2335_v34  ;;  %v668_v56 = vrot.slane %v606_v63, 1 }
  0xab   : > { %1670 = vpow2.f32 %v1174_v3  ;;  %v577_v22 = vadd.f32 %v561_v59, %v539_v21  ;;  %v669_v19 = vrot.slane %v607_v61, 1  ;;  %v732_v31 = vmul.f32 %v2424_v48, %v2325_v6 }
  0xac   : > { %v1665_v4 = vpop.eup %1664  ;;  %v578_v30 = vadd.f32 %v562_v62, %v540_v26  ;;  %v671_v16 = vrot.slane %v608_v29, 1  ;;  %v733_v10 = vmul.f32 %v2424_v48, %v2330_v5  ;;  %v734_v37 = vmul.f32 %v2424_v48, %v2335_v34 }
  0xad   : > { %v1667_v40 = vpop.eup %1666  ;;  %v1236_v47 = vmul.f32 %v1665_v4, %v2386_v14  ;;  %v670_v43 = vsel %vm341_vm1, %v668_v56, %v669_v19  ;;  %v794_v23 = vrot.slane %v732_v31, 2  ;;  %v851_v60 = vmul.f32 %v2440_v41, %v253_v12 }
  0xae   : > { %v1237_v6 = vmul.f32 %v1667_v40, %v2389_v2  ;;  %v672_v44 = vsel %vm341_vm1, %v669_v19, %v671_v16  ;;  %v703_v7 = vadd.f32 %v670_v43, %v577_v22  ;;  %v795_v49 = vrot.slane %v733_v10, 2 }
  0xaf   : > { %v704_v50 = vadd.f32 %v672_v44, %v578_v30  ;;  %v797_v5 = vrot.slane %v734_v37, 2  ;;  %v852_v53 = vmul.f32 %v2440_v41, %v254_v42  ;;  %v896_v34 = vmul.f32 %v2449_v25, %v253_v12 }
  0xb0   : > { %v1247_v48 = vpack.c.bf16 %v1237_v6, %v1236_v47  ;;  %v796_v14 = vsel %vm468_vm2, %v794_v23, %v795_v49  ;;  %v897_v27 = vmul.f32 %v2449_v25, %v254_v42  ;;  %v898_v45 = vmul.f32 %v2449_v25, %v255_v38 }
  0xb1   : > { %v798_v18 = vsel %vm468_vm2, %v795_v49, %v797_v5  ;;  %v829_v2 = vadd.f32 %v796_v14, %v703_v7  ;;  %v958_v51 = vrot.slane %v896_v34, 1  ;;  %v1022_v33 = vmul.f32 %v2461_v36, %v253_v12 }
  0xb2   : > { %1603 = vmatprep.mubr.msk.bf16.mxu1 %vm1256_vm3, %v1247_v48  ;;  %v830_v55 = vadd.f32 %v798_v18, %v704_v50  ;;  %v959_v57 = vrot.slane %v897_v27, 1  ;;  %v961_v41 = vrot.slane %v898_v45, 1  ;;  %v1023_v0 = vmul.f32 %v2461_v36, %v254_v42 }
  0xb3   : > { %v867_v15 = vadd.f32 %v851_v60, %v829_v2  ;;  %v1024_v24 = vmul.f32 %v2461_v36, %v255_v38  ;;  %v1084_v1 = vrot.slane %v1022_v33, 2 }
  0xb4   : > { %v1669_v59 = vpop.eup %1668  ;;  %v868_v35 = vadd.f32 %v852_v53, %v830_v55  ;;  %v960_v25 = vsel %vm341_vm1, %v958_v51, %v959_v57  ;;  %v962_v58 = vsel %vm341_vm1, %v959_v57, %v961_v41  ;;  %v1085_v17 = vrot.slane %v1023_v0, 2 }
  0xb5   : > { %v1671_v13 = vpop.eup %1670  ;;  %v1198_v20 = vadd.f32 1.0, %v1669_v59  ;;  %v993_v8 = vadd.f32 %v960_v25, %v867_v15  ;;  %v1087_v11 = vrot.slane %v1024_v24, 2 }
  0xb6   : > { %v1199_v52 = vadd.f32 1.0, %v1671_v13  ;;  %v994_v9 = vadd.f32 %v962_v58, %v868_v35  ;;  %v1086_v39 = vsel %vm468_vm2, %v1084_v1, %v1085_v17 }
  0xb7   : > { %1672 = vrcp.f32 %v1198_v20  ;;  %v1088_v62 = vsel %vm468_vm2, %v1085_v17, %v1087_v11  ;;  %v1119_v36 = vadd.f32 %v1086_v39, %v993_v8 }
  0xb8   : > { %1674 = vrcp.f32 %v1199_v52  ;;  %v1120_v63 = vadd.f32 %v1088_v62, %v994_v9 }
  0xb9   : > { %v1142_v3 = vadd.f32 %v2489_v32, %v1119_v36 }
  0xba   : > { %v1143_v54 = vadd.f32 %v2489_v32, %v1120_v63 }
  0xbb   : > { %v1158_v21 = vsub.f32 0.0, %v1142_v3 }
  0xbc   : > { %v1159_v61 = vsub.f32 0.0, %v1143_v54 }
  0xbd   : > { %v1188_v12 = vmul.f32 1.442695, %v1158_v21 }
  0xbe   : > { %v1190_v26 = vmul.f32 1.442695, %v1159_v61 }
  0xbf   : > { %1676 = vpow2.f32 %v1188_v12 }
  0xc0   : > { %1678 = vpow2.f32 %v1190_v26 }
  0xc1   : > { %v1673_v29 = vpop.eup %1672 }
  0xc2   : > { %v1675_v56 = vpop.eup %1674  ;;  %v1230_v22 = vmul.f32 %v1673_v29, %v2492_v28  ;;  %v2554_v28 = vld [vmem:[%s2617_s4] ss:$0 sm:$0xff] }
  0xc3   : > { %v1231_v19 = vmul.f32 %v1675_v56, %v2497_v46 }
  0xc5   : > { %v1244_v31 = vpack.c.bf16 %v1231_v19, %v1230_v22 }
  0xc7   : > { %1596 = vmatmul.mubr.msk.bf16.gmra.mrb[4].mxu0 %vm1256_vm3, %v1244_v31 }
  0xc9   : > { %v1677_v4 = vpop.eup %1676 }
  0xca   : > { %v1679_v42 = vpop.eup %1678  ;;  %v1206_v30 = vadd.f32 1.0, %v1677_v4 }
  0xcb   : > { %v1207_v16 = vadd.f32 1.0, %v1679_v42 }
  0xcc   : > { %1680 = vrcp.f32 %v1206_v30 }
  0xcd   : > { %1682 = vrcp.f32 %v1207_v16 }
  0xd6   : > { %v1681_v32 = vpop.eup %1680 }
  0xd7   : > { %v1683_v10 = vpop.eup %1682  ;;  %v1238_v37 = vmul.f32 %v1681_v32, %v1142_v3 }
  0xd8   : > { %v1239_v40 = vmul.f32 %v1683_v10, %v1143_v54 }
  0xda   : > { %v1248_v47 = vpack.c.bf16 %v1239_v40, %v1238_v37 }
  0xdc   : > { %1604 = vmatmul.mubr.msk.bf16.gmra.mrb[4].mxu1 %vm1256_vm3, %v1248_v47 }
 0x146   : > { %v1593_v46 = vpop.f32.mrb[0].mxu0 }
 0x147   : > { %v1328_v38 = vadd.f32 %v1593_v46, %v2554_v28  ;;  %v1319_v43 = vpop.f32.mrb[1].mxu0 }
 0x148   : > { %v1320_v23 = vadd.f32 %v2554_v28, %v1319_v43  ;;  %v1594_v60 = vpop.f32.mrb[2].mxu0 }
 0x149   : > { %v1384_v6 = vsub.f32 0.0, %v1328_v38  ;;  %v1331_v44 = vadd.f32 %v1594_v60, %v2554_v28  ;;  %v1322_v7 = vpop.f32.mrb[3].mxu0 }
 0x14a   : > { %v1382_v49 = vsub.f32 0.0, %v1320_v23  ;;  %v1323_v50 = vadd.f32 %v2554_v28, %v1322_v7 }
 0x14b   : > { %v1402_v5 = vmul.f32 1.442695, %v1384_v6  ;;  %v1385_v53 = vsub.f32 0.0, %v1331_v44 }
 0x14c   : > { %v1398_v34 = vmul.f32 1.442695, %v1382_v49  ;;  %v1383_v48 = vsub.f32 0.0, %v1323_v50 }
 0x14d   : > { %1684 = vpow2.f32 %v1402_v5  ;;  %v1404_v14 = vmul.f32 1.442695, %v1385_v53 }
 0x14e   : > { %1686 = vpow2.f32 %v1398_v34  ;;  %v1400_v27 = vmul.f32 1.442695, %v1383_v48 }
 0x14f   : > { %1688 = vpow2.f32 %v1404_v14 }
 0x150   : > { %1690 = vpow2.f32 %v1400_v27 }
 0x157   : > { %v1685_v45 = vpop.eup %1684 }
 0x158   : > { %v1687_v18 = vpop.eup %1686  ;;  %v1432_v2 = vadd.f32 1.0, %v1685_v45 }
 0x159   : > { %v1689_v51 = vpop.eup %1688  ;;  %v1430_v33 = vadd.f32 1.0, %v1687_v18 }
 0x15a   : > { %v1691_v55 = vpop.eup %1690  ;;  %1692 = vrcp.f32 %v1432_v2  ;;  %v1433_v57 = vadd.f32 1.0, %v1689_v51 }
 0x15b   : > { %v1601_v41 = vpop.f32.mrb[0].mxu1  ;;  %1694 = vrcp.f32 %v1430_v33  ;;  %v1431_v0 = vadd.f32 1.0, %v1691_v55 }
 0x15c   : > { %v1360_v15 = vadd.f32 %v1601_v41, %v2554_v28  ;;  %v1351_v24 = vpop.f32.mrb[1].mxu1  ;;  %1696 = vrcp.f32 %v1433_v57 }
 0x15d   : > { %v1352_v1 = vadd.f32 %v2554_v28, %v1351_v24  ;;  %v1602_v59 = vpop.f32.mrb[2].mxu1  ;;  %1698 = vrcp.f32 %v1431_v0 }
 0x15e   : > { %v1392_v35 = vsub.f32 0.0, %v1360_v15  ;;  %v1363_v25 = vadd.f32 %v1602_v59, %v2554_v28  ;;  %v1354_v58 = vpop.f32.mrb[3].mxu1 }
 0x15f   : > { %v1390_v17 = vsub.f32 0.0, %v1352_v1  ;;  %v1355_v13 = vadd.f32 %v2554_v28, %v1354_v58 }
 0x160   : > { %v1418_v20 = vmul.f32 1.442695, %v1392_v35  ;;  %v1393_v8 = vsub.f32 0.0, %v1363_v25 }
 0x161   : > { %v1414_v11 = vmul.f32 1.442695, %v1390_v17  ;;  %v1391_v52 = vsub.f32 0.0, %v1355_v13 }
 0x162   : > { %1700 = vpow2.f32 %v1418_v20  ;;  %v1420_v9 = vmul.f32 1.442695, %v1393_v8 }
 0x163   : > { %1702 = vpow2.f32 %v1414_v11  ;;  %v1416_v39 = vmul.f32 1.442695, %v1391_v52 }
 0x164   : > { %v1693_v62 = vpop.eup %1692  ;;  %1704 = vpow2.f32 %v1420_v9 }
 0x165   : > { %v1695_v36 = vpop.eup %1694  ;;  %v1464_v63 = vmul.f32 %v1693_v62, %v1328_v38  ;;  %1706 = vpow2.f32 %v1416_v39 }
 0x166   : > { %v1697_v3 = vpop.eup %1696  ;;  %v1462_v54 = vmul.f32 %v1695_v36, %v1320_v23 }
 0x167   : > { %v1699_v21 = vpop.eup %1698  ;;  %1481 = vst.msk [vmem:[%s2568_s25 + $0x10] sm:$0xff] %vm1478_vm4, %v1464_v63  ;;  %v1465_v61 = vmul.f32 %v1697_v3, %v1331_v44 }
 0x168   : > { %1479 = vst.msk [vmem:[%s2568_s25] sm:$0xff] %vm1478_vm4, %v1462_v54  ;;  %v1463_v12 = vmul.f32 %v1699_v21, %v1323_v50 }
 0x169   : > { %1482 = vst.msk [vmem:[%s2568_s25 + $0x18] sm:$0xff] %vm1478_vm4, %v1465_v61 }
 0x16a   : > { %1480 = vst.msk [vmem:[%s2568_s25 + $0x8] sm:$0xff] %vm1478_vm4, %v1463_v12 }
 0x16c   : > { %v1701_v26 = vpop.eup %1700 }
 0x16d   : > { %v1703_v29 = vpop.eup %1702  ;;  %v1440_v56 = vadd.f32 1.0, %v1701_v26 }
 0x16e   : > { %v1705_v22 = vpop.eup %1704  ;;  %v1438_v19 = vadd.f32 1.0, %v1703_v29 }
 0x16f   : > { %v1707_v31 = vpop.eup %1706  ;;  %1708 = vrcp.f32 %v1440_v56  ;;  %v1441_v4 = vadd.f32 1.0, %v1705_v22 }
 0x170   : > { %1710 = vrcp.f32 %v1438_v19  ;;  %v1439_v42 = vadd.f32 1.0, %v1707_v31 }
 0x171   : > { %1712 = vrcp.f32 %v1441_v4 }
 0x172   : > { %1714 = vrcp.f32 %v1439_v42 }
 0x179   : > { %v1709_v30 = vpop.eup %1708 }
 0x17a   : > { %v1711_v16 = vpop.eup %1710  ;;  %v1472_v32 = vmul.f32 %v1709_v30, %v1360_v15 }
 0x17b   : > { %v1713_v10 = vpop.eup %1712  ;;  %v1470_v37 = vmul.f32 %v1711_v16, %v1352_v1 }
 0x17c   : > { %v1715_v40 = vpop.eup %1714  ;;  %1489 = vst.msk [vmem:[%s2568_s25 + $0x50] sm:$0xff] %vm1478_vm4, %v1472_v32  ;;  %v1473_v47 = vmul.f32 %v1713_v10, %v1363_v25 }
 0x17d   : > { %1487 = vst.msk [vmem:[%s2568_s25 + $0x40] sm:$0xff] %vm1478_vm4, %v1470_v37  ;;  %v1471_v46 = vmul.f32 %v1715_v40, %v1355_v13 }
 0x17e   : > { %1490 = vst.msk [vmem:[%s2568_s25 + $0x58] sm:$0xff] %vm1478_vm4, %v1473_v47 }
 0x17f   : > { %1488 = vst.msk [vmem:[%s2568_s25 + $0x48] sm:$0xff] %vm1478_vm4, %v1471_v46 }
 0x19a   : > { %v1597_v38 = vpop.f32.mrb[4].mxu0 }
 0x19b   : > { %v1344_v43 = vadd.f32 %v1597_v38, %v2554_v28  ;;  %v1335_v23 = vpop.f32.mrb[5].mxu0 }
 0x19c   : > { %v1336_v60 = vadd.f32 %v2554_v28, %v1335_v23  ;;  %v1598_v6 = vpop.f32.mrb[6].mxu0 }
 0x19d   : > { %v1388_v44 = vsub.f32 0.0, %v1344_v43  ;;  %v1347_v7 = vadd.f32 %v1598_v6, %v2554_v28  ;;  %v1338_v49 = vpop.f32.mrb[7].mxu0 }
 0x19e   : > { %v1386_v50 = vsub.f32 0.0, %v1336_v60  ;;  %v1339_v5 = vadd.f32 %v2554_v28, %v1338_v49 }
 0x19f   : > { %v1410_v53 = vmul.f32 1.442695, %v1388_v44  ;;  %v1389_v34 = vsub.f32 0.0, %v1347_v7 }
 0x1a0   : > { %v1406_v48 = vmul.f32 1.442695, %v1386_v50  ;;  %v1387_v14 = vsub.f32 0.0, %v1339_v5 }
 0x1a1   : > { %1716 = vpow2.f32 %v1410_v53  ;;  %v1412_v27 = vmul.f32 1.442695, %v1389_v34 }
 0x1a2   : > { %1718 = vpow2.f32 %v1406_v48  ;;  %v1408_v45 = vmul.f32 1.442695, %v1387_v14 }
 0x1a3   : > { %1720 = vpow2.f32 %v1412_v27 }
 0x1a4   : > { %1722 = vpow2.f32 %v1408_v45 }
 0x1ab   : > { %v1717_v18 = vpop.eup %1716 }
 0x1ac   : > { %v1719_v2 = vpop.eup %1718  ;;  %v1436_v51 = vadd.f32 1.0, %v1717_v18 }
 0x1ad   : > { %v1721_v33 = vpop.eup %1720  ;;  %v1434_v55 = vadd.f32 1.0, %v1719_v2 }
 0x1ae   : > { %v1723_v57 = vpop.eup %1722  ;;  %1724 = vrcp.f32 %v1436_v51  ;;  %v1437_v41 = vadd.f32 1.0, %v1721_v33 }
 0x1af   : > { %v1605_v0 = vpop.f32.mrb[4].mxu1  ;;  %1726 = vrcp.f32 %v1434_v55  ;;  %v1435_v15 = vadd.f32 1.0, %v1723_v57 }
 0x1b0   : > { %v1376_v24 = vadd.f32 %v1605_v0, %v2554_v28  ;;  %v1367_v1 = vpop.f32.mrb[5].mxu1  ;;  %1728 = vrcp.f32 %v1437_v41 }
 0x1b1   : > { %v1368_v59 = vadd.f32 %v2554_v28, %v1367_v1  ;;  %v1606_v35 = vpop.f32.mrb[6].mxu1  ;;  %1730 = vrcp.f32 %v1435_v15 }
 0x1b2   : > { %v1396_v25 = vsub.f32 0.0, %v1376_v24  ;;  %v1379_v58 = vadd.f32 %v1606_v35, %v2554_v28  ;;  %v1370_v17 = vpop.f32.mrb[7].mxu1 }
 0x1b3   : > { %v1394_v13 = vsub.f32 0.0, %v1368_v59  ;;  %v1371_v20 = vadd.f32 %v2554_v28, %v1370_v17 }
 0x1b4   : > { %v1426_v8 = vmul.f32 1.442695, %v1396_v25  ;;  %v1397_v11 = vsub.f32 0.0, %v1379_v58 }
 0x1b5   : > { %v1422_v52 = vmul.f32 1.442695, %v1394_v13  ;;  %v1395_v9 = vsub.f32 0.0, %v1371_v20 }
 0x1b6   : > { %1732 = vpow2.f32 %v1426_v8  ;;  %v1428_v39 = vmul.f32 1.442695, %v1397_v11 }
 0x1b7   : > { %1734 = vpow2.f32 %v1422_v52  ;;  %v1424_v62 = vmul.f32 1.442695, %v1395_v9 }
 0x1b8   : > { %v1725_v36 = vpop.eup %1724  ;;  %1736 = vpow2.f32 %v1428_v39 }
 0x1b9   : > { %v1727_v63 = vpop.eup %1726  ;;  %v1468_v3 = vmul.f32 %v1725_v36, %v1344_v43  ;;  %1738 = vpow2.f32 %v1424_v62 }
 0x1ba   : > { %v1729_v54 = vpop.eup %1728  ;;  %v1466_v21 = vmul.f32 %v1727_v63, %v1336_v60 }
 0x1bb   : > { %v1731_v28 = vpop.eup %1730  ;;  %1485 = vst.msk [vmem:[%s2568_s25 + $0x30] sm:$0xff] %vm1478_vm4, %v1468_v3  ;;  %v1469_v61 = vmul.f32 %v1729_v54, %v1347_v7 }
 0x1bc   : > { %1483 = vst.msk [vmem:[%s2568_s25 + $0x20] sm:$0xff] %vm1478_vm4, %v1466_v21  ;;  %v1467_v12 = vmul.f32 %v1731_v28, %v1339_v5 }
 0x1bd   : > { %1486 = vst.msk [vmem:[%s2568_s25 + $0x38] sm:$0xff] %vm1478_vm4, %v1469_v61 }
 0x1be   : > { %1484 = vst.msk [vmem:[%s2568_s25 + $0x28] sm:$0xff] %vm1478_vm4, %v1467_v12 }
 0x1c0   : > { %v1733_v26 = vpop.eup %1732 }
 0x1c1   : > { %v1735_v29 = vpop.eup %1734  ;;  %v1444_v56 = vadd.f32 1.0, %v1733_v26 }
 0x1c2   : > { %v1737_v22 = vpop.eup %1736  ;;  %v1442_v19 = vadd.f32 1.0, %v1735_v29 }
 0x1c3   : > { %v1739_v31 = vpop.eup %1738  ;;  %1740 = vrcp.f32 %v1444_v56  ;;  %v1445_v4 = vadd.f32 1.0, %v1737_v22 }
 0x1c4   : > { %1742 = vrcp.f32 %v1442_v19  ;;  %v1443_v42 = vadd.f32 1.0, %v1739_v31 }
 0x1c5   : > { %1744 = vrcp.f32 %v1445_v4 }
 0x1c6   : > { %1746 = vrcp.f32 %v1443_v42 }
 0x1cd   : > { %v1741_v30 = vpop.eup %1740 }
 0x1ce   : > { %v1743_v16 = vpop.eup %1742  ;;  %v1476_v32 = vmul.f32 %v1741_v30, %v1376_v24 }
 0x1cf   : > { %v1745_v10 = vpop.eup %1744  ;;  %v1474_v37 = vmul.f32 %v1743_v16, %v1368_v59 }
 0x1d0   : > { %v1747_v40 = vpop.eup %1746  ;;  %1493 = vst.msk [vmem:[%s2568_s25 + $0x70] sm:$0xff] %vm1478_vm4, %v1476_v32  ;;  %v1477_v47 = vmul.f32 %v1745_v10, %v1379_v58 }
 0x1d1   : > { %1491 = vst.msk [vmem:[%s2568_s25 + $0x60] sm:$0xff] %vm1478_vm4, %v1474_v37  ;;  %v1475_v46 = vmul.f32 %v1747_v40, %v1371_v20 }
 0x1d2   : > { %1494 = vst.msk [vmem:[%s2568_s25 + $0x78] sm:$0xff] %vm1478_vm4, %v1477_v47 }
 0x1d3   : > { %1492 = vst.msk [vmem:[%s2568_s25 + $0x68] sm:$0xff] %vm1478_vm4, %v1475_v46 }
 0x1d4 PF: > { %s15_s18 = sadd.s32 1, %s1764_s18  }
 0x1d5   : > { %p12_p4 = scmp.ge.s32.totalorder %s15_s18, 6  }
 0x1d7   :  { %14 = sbr.rel (!%p12_p4) target bundleno = 1 (0x1), region = 70 }

</bundles_post_ra>
